<compile_context>
chip_gen: v6e
topology: v6e:2x2x1
jax: 0.10.0
libtpu: 0.0.40
codegen_flags: <defaults>
</compile_context>

<pallas_src>
import functools
import math

import jax
import jax.numpy as jnp
import numpy as np
from jax.experimental import pallas as pl
from jax.experimental.pallas import tpu as pltpu

# ---------------- model hyper-parameters (small, consistent with the module) ----
X_DIM = 8
Y_DIM = 4
N_COND_LAYERS = 2
HIDDEN_DIM = 32
N_PARAMS = 2
N_FLOWS = 3
ALPHA = 1.0
BATCH = 4

assert X_DIM % 2 == 0  # packing assumes equal-size coupling halves
assert N_PARAMS == 2   # conditioner outputs (t, s)


def _pad8(n):
    return -(-n // 8) * 8


# ----------------------------- in-kernel math helpers ---------------------------
def _elu(x):
    # torch.nn.functional.elu with alpha=1:  x if x>0 else exp(x)-1
    return jnp.where(x > 0, x, jnp.exp(x) - 1.0)


def _atan(x):
    """float32 arctan via Cephes-style range reduction + degree-9 odd polynomial.

    lax.atan has no Mosaic TPU lowering, so build it from VPU ops:
      |x| >  tan(3pi/8): atan(|x|) = pi/2 + atan(-1/|x|)
      |x| >  tan(pi/8) : atan(|x|) = pi/4 + atan((|x|-1)/(|x|+1))
      else             : polynomial directly
    Max relative error ~2e-7 (far inside the 5e-3 test tolerance).
    """
    sign = jnp.where(x >= 0.0, 1.0, -1.0)
    ax = jnp.abs(x)
    t_hi = 2.414213562373095     # tan(3*pi/8)
    t_lo = 0.4142135623730950    # tan(pi/8)
    w = jnp.where(ax > t_hi, -1.0 / ax,
                  jnp.where(ax > t_lo, (ax - 1.0) / (ax + 1.0), ax))
    y0 = jnp.where(ax > t_hi, 0.5 * math.pi,
                   jnp.where(ax > t_lo, 0.25 * math.pi, 0.0))
    z = w * w
    p = (((8.05374449538e-2 * z - 1.38776856032e-1) * z
          + 1.99777106478e-1) * z - 3.33329491539e-1)
    return sign * (y0 + p * z * w + w)


# ----------------------------- weight-slab layout --------------------------------
def _cond_offsets(d, y_dim, hidden, n_layers):
    """Row offsets of one conditioner's weights inside the slab (all 8-aligned)."""
    offs = {}
    o = 0
    offs['wu'] = o; o += _pad8(d)          # (d, hidden)
    offs['wy'] = o; o += _pad8(y_dim)      # (y_dim, hidden)
    offs['bi'] = o; o += 8                 # (1, hidden)
    offs['wh'] = []
    offs['bh'] = []
    for _ in range(n_layers):
        offs['wh'].append(o); o += _pad8(hidden)   # (hidden, hidden)
        offs['bh'].append(o); o += 8               # (1, hidden)
    offs['wout'] = o; o += _pad8(hidden)   # (hidden, 2*d)  [t cols | s cols]
    offs['bout'] = o; o += 8               # (1, 2*d)
    offs['size'] = o
    return offs


# --------------------------------- fused kernel ---------------------------------
def fused_flow_kernel(x_ref, y_ref, w_ref, z_ref, ld_ref, *,
                      n_flows, n_layers, d, y_dim, hidden, x_dim, alpha):
    co = _cond_offsets(d, y_dim, hidden, n_layers)
    cond_rows = co['size']
    d8 = _pad8(d)
    perm_base = 2 * n_flows * cond_rows
    perm_rows = 2 * d8

    x = x_ref[...]                       # (B, X)  stays resident in vregs
    y = y_ref[...]                       # (B, Y)
    u1 = x[:, :d]
    u2 = x[:, d:]
    batch = x.shape[0]
    ld = jnp.zeros((batch, 1), jnp.float32)

    # Hoisted, loop-invariant y-contributions of every conditioner input layer:
    # concat(u, y) @ W_in + b_in  ==  u @ W_u  +  (y @ W_y + b_in).
    # These 6 tiny dots are independent -> off the serial critical chain.
    yb = []
    for idx in range(2 * n_flows):
        base = idx * cond_rows
        wy = w_ref[base + co['wy']: base + co['wy'] + y_dim, :hidden]
        bi = w_ref[base + co['bi']: base + co['bi'] + 1, :hidden]
        yb.append(jnp.dot(y, wy, preferred_element_type=jnp.float32) + bi)

    if alpha is not None:
        squash_scale = 2.0 * alpha / math.pi
        inv_alpha = 1.0 / alpha

    def conditioner(u_part, idx):
        base = idx * cond_rows
        wu = w_ref[base + co['wu']: base + co['wu'] + d, :hidden]
        h = _elu(jnp.dot(u_part, wu, preferred_element_type=jnp.float32) + yb[idx])
        for l in range(n_layers):          # static unroll (tiny, fixed)
            wh = w_ref[base + co['wh'][l]: base + co['wh'][l] + hidden, :hidden]
            bh = w_ref[base + co['bh'][l]: base + co['bh'][l] + 1, :hidden]
            h = h + _elu(jnp.dot(h, wh, preferred_element_type=jnp.float32) + bh)
        # fused (t, s) projection: one matmul, then cheap lane slices
        wout = w_ref[base + co['wout']: base + co['wout'] + hidden, :2 * d]
        bout = w_ref[base + co['bout']: base + co['bout'] + 1, :2 * d]
        o = jnp.dot(h, wout, preferred_element_type=jnp.float32) + bout
        return o[:, :d], o[:, d:]

    u_next = x
    for f in range(n_flows):               # static unroll over the flows
        t1, s1 = conditioner(u2, 2 * f + 0)
        if alpha is not None:
            s1 = squash_scale * _atan(s1 * inv_alpha)
        v1 = u1 * jnp.exp(s1) + t1

        t2, s2 = conditioner(v1, 2 * f + 1)
        if alpha is not None:
            s2 = squash_scale * _atan(s2 * inv_alpha)
        v2 = u2 * jnp.exp(s2) + t2

        ld = ld + (jnp.sum(s1, axis=-1, keepdims=True)
                   + jnp.sum(s2, axis=-1, keepdims=True))

        # PermutationLayer: v[:, perm] == [v1|v2] @ P == v1 @ P_top + v2 @ P_bot
        pbase = perm_base + f * perm_rows
        p_top = w_ref[pbase: pbase + d, :x_dim]
        p_bot = w_ref[pbase + d8: pbase + d8 + d, :x_dim]
        u_next = (jnp.dot(v1, p_top, preferred_element_type=jnp.float32)
                  + jnp.dot(v2, p_bot, preferred_element_type=jnp.float32))
        u1 = u_next[:, :d]
        u2 = u_next[:, d:]

    z_ref[...] = u_next                    # single full-width store
    ld_ref[...] = ld


def model_forward(slab, x, y, *, x_dim=X_DIM, y_dim=Y_DIM, hidden=HIDDEN_DIM,
                  n_layers=N_COND_LAYERS, n_flows=N_FLOWS, alpha=ALPHA):
    """ConditionalNormalizingFlow.forward: returns (z, sum_log_abs_det)."""
    batch = x.shape[0]
    d = x_dim // 2
    kernel = functools.partial(
        fused_flow_kernel, n_flows=n_flows, n_layers=n_layers, d=d,
        y_dim=y_dim, hidden=hidden, x_dim=x_dim, alpha=alpha)
    # Advisory cost estimate for XLA's scheduler.
    flops = (2 * batch * 2 * n_flows * hidden * (d + y_dim + n_layers * hidden + 2 * d)
             + 2 * batch * n_flows * x_dim * x_dim)
    transcendentals = batch * n_flows * 2 * d * 4
    bytes_accessed = 4 * (x.size + y.size + slab.size + batch * x_dim + batch)
    vmem = pl.BlockSpec(memory_space=pltpu.MemorySpace.VMEM)
    z, ld = pl.pallas_call(
        kernel,
        out_shape=(jax.ShapeDtypeStruct((batch, x_dim), jnp.float32),
                   jax.ShapeDtypeStruct((batch, 1), jnp.float32)),
        in_specs=[vmem, vmem, vmem],
        out_specs=(vmem, vmem),
        cost_estimate=pl.CostEstimate(flops=int(flops),
                                      transcendentals=int(transcendentals),
                                      bytes_accessed=int(bytes_accessed)),
    )(x, y, slab)
    return z, ld[:, 0]


# --------------------------- parameter construction -----------------------------
def init_linear(key, in_dim, out_dim):
    k1, k2 = jax.random.split(key)
    bound = 1.0 / math.sqrt(in_dim)
    w = jax.random.uniform(k1, (in_dim, out_dim), jnp.float32, -bound, bound)
    b = jax.random.uniform(k2, (1, out_dim), jnp.float32, -bound, bound)
    return w, b


def init_conditioner(key, in_dim, out_dim, n_layers, hidden_dim, n_params):
    keys = jax.random.split(key, 2 + n_layers)
    w_in, b_in = init_linear(keys[0], in_dim, hidden_dim)
    whs, bhs = [], []
    for l in range(n_layers):
        w, b = init_linear(keys[1 + l], hidden_dim, hidden_dim)
        whs.append(w)
        bhs.append(b)
    w_h = jnp.stack(whs)                      # (L, H, H)
    b_h = jnp.stack(bhs)                      # (L, 1, H)
    w_out, b_out = init_linear(keys[1 + n_layers], hidden_dim, out_dim * n_params)
    return (w_in, b_in, w_h, b_h, w_out, b_out)


def init_flow(key, x_dim, y_dim, n_cond_layers, hidden_dim, n_params):
    k1, k2, k3 = jax.random.split(key, 3)
    dim2 = x_dim // 2
    dim1 = x_dim - dim2
    theta1 = init_conditioner(k1, dim2 + y_dim, dim1, n_cond_layers, hidden_dim, n_params)
    theta2 = init_conditioner(k2, dim1 + y_dim, dim2, n_cond_layers, hidden_dim, n_params)
    perm = jax.random.permutation(k3, x_dim)
    return (theta1, theta2, perm)


def pack_params(params, x_dim, y_dim, hidden, n_layers):
    """Pack all per-flow weights into ONE flat f32 slab (rows 8-aligned).

    Layout per conditioner: W_u | W_y | b_in | (W_h, b_h)*L | W_out | b_out,
    with W_in split into its u / y row blocks (so the kernel never concatenates)
    and W_out kept whole (t cols then s cols, split in-kernel by lane slice).
    Permutations stored as one-hot row blocks P_top / P_bot so the kernel applies
    them as two block matmuls producing the full-width permuted state.
    """
    dim2 = x_dim // 2
    dim1 = x_dim - dim2
    assert dim1 == dim2
    d = dim1
    n_flows = len(params)
    co = _cond_offsets(d, y_dim, hidden, n_layers)
    cond_rows = co['size']
    perm_rows = 2 * _pad8(d)
    total_rows = 2 * n_flows * cond_rows + n_flows * perm_rows
    lanes = max(hidden, x_dim)
    slab = np.zeros((total_rows, lanes), np.float32)

    def put(r0, arr):
        arr = np.asarray(arr, np.float32)
        slab[r0:r0 + arr.shape[0], :arr.shape[1]] = arr

    for f, (theta1, theta2, perm) in enumerate(params):
        for c, theta in enumerate((theta1, theta2)):
            w_in, b_in, w_h, b_h, w_out, b_out = theta
            base = (2 * f + c) * cond_rows
            put(base + co['wu'], w_in[:d, :])
            put(base + co['wy'], w_in[d:, :])
            put(base + co['bi'], b_in)
            for l in range(n_layers):
                put(base + co['wh'][l], w_h[l])
                put(base + co['bh'][l], b_h[l])
            put(base + co['wout'], w_out)
            put(base + co['bout'], b_out)
        P = np.eye(x_dim, dtype=np.float32)[:, np.asarray(perm)]   # v[:, perm] == v @ P
        pbase = 2 * n_flows * cond_rows + f * perm_rows
        put(pbase, P[:d, :])
        put(pbase + _pad8(d), P[d:, :])
    return jnp.asarray(slab)


# ------------------------------ pure-JAX reference ------------------------------
def _dot_hp(a, b):
    return jnp.dot(a, b, precision=jax.lax.Precision.HIGHEST)


def conditioner_ref(xin, theta):
    w_in, b_in, w_h, b_h, w_out, b_out = theta
    h = _elu(_dot_hp(xin, w_in) + b_in)
    for l in range(w_h.shape[0]):
        h = h + _elu(_dot_hp(h, w_h[l]) + b_h[l])
    return _dot_hp(h, w_out) + b_out


def model_forward_ref(params, x, y, alpha=ALPHA):
    sum_ld = jnp.zeros((x.shape[0],), jnp.float32)
    for theta1, theta2, perm in params:
        n_in = x.shape[1]
        dim2 = n_in // 2
        dim1 = n_in - dim2
        u1, u2 = x[:, :dim1], x[:, dim1:]
        o1 = conditioner_ref(jnp.concatenate([u2, y], axis=1), theta1)
        t1, s1 = o1[:, :dim1], o1[:, dim1:2 * dim1]
        if alpha is not None:
            s1 = (2.0 * alpha / math.pi) * jnp.arctan(s1 / alpha)
        v1 = u1 * jnp.exp(s1) + t1
        o2 = conditioner_ref(jnp.concatenate([v1, y], axis=1), theta2)
        t2, s2 = o2[:, :dim2], o2[:, dim2:2 * dim2]
        if alpha is not None:
            s2 = (2.0 * alpha / math.pi) * jnp.arctan(s2 / alpha)
        v2 = u2 * jnp.exp(s2) + t2
        log_det = jnp.sum(s1, axis=-1) + jnp.sum(s2, axis=-1)
        v = jnp.concatenate([v1, v2], axis=-1)
        x = v[:, perm]
        sum_ld = sum_ld + log_det
    return x, sum_ld


# ------------------------------------- main --------------------------------------
if __name__ == "__main__":
    root = jax.random.PRNGKey(0)
    k_params, k_x, k_y = jax.random.split(root, 3)

    flow_keys = jax.random.split(k_params, N_FLOWS)
    params = [init_flow(flow_keys[i], X_DIM, Y_DIM, N_COND_LAYERS, HIDDEN_DIM, N_PARAMS)
              for i in range(N_FLOWS)]
    slab = pack_params(params, X_DIM, Y_DIM, HIDDEN_DIM, N_COND_LAYERS)

    x = jax.random.normal(k_x, (BATCH, X_DIM), jnp.float32)
    y = jax.random.normal(k_y, (BATCH, Y_DIM), jnp.float32)

    fwd = jax.jit(functools.partial(model_forward, alpha=ALPHA))
    z, sum_log_abs_det = fwd(slab, x, y)
    jax.block_until_ready((z, sum_log_abs_det))

    z_ref, ld_ref = model_forward_ref(params, x, y)
    np.testing.assert_allclose(np.asarray(z), np.asarray(z_ref), rtol=5e-3, atol=5e-3)
    np.testing.assert_allclose(np.asarray(sum_log_abs_det), np.asarray(ld_ref),
                               rtol=5e-3, atol=5e-3)

    # TODO(synk): latent MultivariateNormal sample()/log_prob() (not part of forward)
    # are intentionally not implemented as kernels.
    print("KERNEL_OK")
</pallas_src>

<mosaic_0001>
module attributes {stable_mosaic.version = 11 : i64} {
  func.func @fused_flow_kernel(%arg0: memref<4x8xf32, #tpu.memory_space<vmem>>, %arg1: memref<4x4xf32, #tpu.memory_space<vmem>>, %arg2: memref<912x32xf32, #tpu.memory_space<vmem>>, %arg3: memref<4x8xf32, #tpu.memory_space<vmem>>, %arg4: memref<4x1xf32, #tpu.memory_space<vmem>>) attributes {dimension_semantics = [], scalar_prefetch = 0 : i64, scratch_operands = 0 : i64, tpu.core_type = #tpu.core_type<tc>} {
    %c0 = arith.constant 0 : index
    %c0_0 = arith.constant 0 : index
    %0 = vector.load %arg0[%c0, %c0_0] : memref<4x8xf32, #tpu.memory_space<vmem>>, vector<4x8xf32>
    %c0_1 = arith.constant 0 : index
    %c0_2 = arith.constant 0 : index
    %1 = vector.load %arg1[%c0_1, %c0_2] : memref<4x4xf32, #tpu.memory_space<vmem>>, vector<4x4xf32>
    %2 = vector.extract_strided_slice %0 {offsets = [0, 0], sizes = [4, 4], strides = [1, 1]} : vector<4x8xf32> to vector<4x4xf32>
    %3 = vector.extract_strided_slice %0 {offsets = [0, 4], sizes = [4, 4], strides = [1, 1]} : vector<4x8xf32> to vector<4x4xf32>
    %cst = arith.constant 0.000000e+00 : f32
    %4 = vector.broadcast %cst : f32 to vector<4x1xf32>
    %c8 = arith.constant 8 : index
    %c0_3 = arith.constant 0 : index
    %5 = vector.load %arg2[%c8, %c0_3] : memref<912x32xf32, #tpu.memory_space<vmem>>, vector<4x32xf32>
    %c16 = arith.constant 16 : index
    %c0_4 = arith.constant 0 : index
    %6 = vector.load %arg2[%c16, %c0_4] : memref<912x32xf32, #tpu.memory_space<vmem>>, vector<1x32xf32>
    %cst_5 = arith.constant dense<0.000000e+00> : vector<4x32xf32>
    %7 = tpu.matmul %1, %5, %cst_5 {dimension_numbers = #tpu.dot_dimension_numbers<[1], [0], [0], [1], [0, 0, 1, 1], [], []>} : vector<4x4xf32>, vector<4x32xf32>, vector<4x32xf32> -> vector<4x32xf32>
    %8 = vector.broadcast %6 : vector<1x32xf32> to vector<4x32xf32>
    %9 = arith.addf %7, %8 : vector<4x32xf32>
    %c152 = arith.constant 152 : index
    %c0_6 = arith.constant 0 : index
    %10 = vector.load %arg2[%c152, %c0_6] : memref<912x32xf32, #tpu.memory_space<vmem>>, vector<4x32xf32>
    %c160 = arith.constant 160 : index
    %c0_7 = arith.constant 0 : index
    %11 = vector.load %arg2[%c160, %c0_7] : memref<912x32xf32, #tpu.memory_space<vmem>>, vector<1x32xf32>
    %cst_8 = arith.constant dense<0.000000e+00> : vector<4x32xf32>
    %12 = tpu.matmul %1, %10, %cst_8 {dimension_numbers = #tpu.dot_dimension_numbers<[1], [0], [0], [1], [0, 0, 1, 1], [], []>} : vector<4x4xf32>, vector<4x32xf32>, vector<4x32xf32> -> vector<4x32xf32>
    %13 = vector.broadcast %11 : vector<1x32xf32> to vector<4x32xf32>
    %14 = arith.addf %12, %13 : vector<4x32xf32>
    %c296 = arith.constant 296 : index
    %c0_9 = arith.constant 0 : index
    %15 = vector.load %arg2[%c296, %c0_9] : memref<912x32xf32, #tpu.memory_space<vmem>>, vector<4x32xf32>
    %c304 = arith.constant 304 : index
    %c0_10 = arith.constant 0 : index
    %16 = vector.load %arg2[%c304, %c0_10] : memref<912x32xf32, #tpu.memory_space<vmem>>, vector<1x32xf32>
    %cst_11 = arith.constant dense<0.000000e+00> : vector<4x32xf32>
    %17 = tpu.matmul %1, %15, %cst_11 {dimension_numbers = #tpu.dot_dimension_numbers<[1], [0], [0], [1], [0, 0, 1, 1], [], []>} : vector<4x4xf32>, vector<4x32xf32>, vector<4x32xf32> -> vector<4x32xf32>
    %18 = vector.broadcast %16 : vector<1x32xf32> to vector<4x32xf32>
    %19 = arith.addf %17, %18 : vector<4x32xf32>
    %c440 = arith.constant 440 : index
    %c0_12 = arith.constant 0 : index
    %20 = vector.load %arg2[%c440, %c0_12] : memref<912x32xf32, #tpu.memory_space<vmem>>, vector<4x32xf32>
    %c448 = arith.constant 448 : index
    %c0_13 = arith.constant 0 : index
    %21 = vector.load %arg2[%c448, %c0_13] : memref<912x32xf32, #tpu.memory_space<vmem>>, vector<1x32xf32>
    %cst_14 = arith.constant dense<0.000000e+00> : vector<4x32xf32>
    %22 = tpu.matmul %1, %20, %cst_14 {dimension_numbers = #tpu.dot_dimension_numbers<[1], [0], [0], [1], [0, 0, 1, 1], [], []>} : vector<4x4xf32>, vector<4x32xf32>, vector<4x32xf32> -> vector<4x32xf32>
    %23 = vector.broadcast %21 : vector<1x32xf32> to vector<4x32xf32>
    %24 = arith.addf %22, %23 : vector<4x32xf32>
    %c584 = arith.constant 584 : index
    %c0_15 = arith.constant 0 : index
    %25 = vector.load %arg2[%c584, %c0_15] : memref<912x32xf32, #tpu.memory_space<vmem>>, vector<4x32xf32>
    %c592 = arith.constant 592 : index
    %c0_16 = arith.constant 0 : index
    %26 = vector.load %arg2[%c592, %c0_16] : memref<912x32xf32, #tpu.memory_space<vmem>>, vector<1x32xf32>
    %cst_17 = arith.constant dense<0.000000e+00> : vector<4x32xf32>
    %27 = tpu.matmul %1, %25, %cst_17 {dimension_numbers = #tpu.dot_dimension_numbers<[1], [0], [0], [1], [0, 0, 1, 1], [], []>} : vector<4x4xf32>, vector<4x32xf32>, vector<4x32xf32> -> vector<4x32xf32>
    %28 = vector.broadcast %26 : vector<1x32xf32> to vector<4x32xf32>
    %29 = arith.addf %27, %28 : vector<4x32xf32>
    %c728 = arith.constant 728 : index
    %c0_18 = arith.constant 0 : index
    %30 = vector.load %arg2[%c728, %c0_18] : memref<912x32xf32, #tpu.memory_space<vmem>>, vector<4x32xf32>
    %c736 = arith.constant 736 : index
    %c0_19 = arith.constant 0 : index
    %31 = vector.load %arg2[%c736, %c0_19] : memref<912x32xf32, #tpu.memory_space<vmem>>, vector<1x32xf32>
    %cst_20 = arith.constant dense<0.000000e+00> : vector<4x32xf32>
    %32 = tpu.matmul %1, %30, %cst_20 {dimension_numbers = #tpu.dot_dimension_numbers<[1], [0], [0], [1], [0, 0, 1, 1], [], []>} : vector<4x4xf32>, vector<4x32xf32>, vector<4x32xf32> -> vector<4x32xf32>
    %33 = vector.broadcast %31 : vector<1x32xf32> to vector<4x32xf32>
    %34 = arith.addf %32, %33 : vector<4x32xf32>
    %c0_21 = arith.constant 0 : index
    %c0_22 = arith.constant 0 : index
    %35 = vector.load %arg2[%c0_21, %c0_22] : memref<912x32xf32, #tpu.memory_space<vmem>>, vector<4x32xf32>
    %cst_23 = arith.constant dense<0.000000e+00> : vector<4x32xf32>
    %36 = tpu.matmul %3, %35, %cst_23 {dimension_numbers = #tpu.dot_dimension_numbers<[1], [0], [0], [1], [0, 0, 1, 1], [], []>} : vector<4x4xf32>, vector<4x32xf32>, vector<4x32xf32> -> vector<4x32xf32>
    %37 = arith.addf %36, %9 : vector<4x32xf32>
    %cst_24 = arith.constant 0.000000e+00 : f32
    %38 = vector.broadcast %cst_24 : f32 to vector<4x32xf32>
    %39 = arith.cmpf ogt, %37, %38 : vector<4x32xf32>
    %40 = math.exp %37 : vector<4x32xf32>
    %cst_25 = arith.constant 1.000000e+00 : f32
    %41 = vector.broadcast %cst_25 : f32 to vector<4x32xf32>
    %42 = arith.subf %40, %41 : vector<4x32xf32>
    %43 = arith.select %39, %37, %42 : vector<4x32xi1>, vector<4x32xf32>
    %c24 = arith.constant 24 : index
    %c0_26 = arith.constant 0 : index
    %44 = vector.load %arg2[%c24, %c0_26] : memref<912x32xf32, #tpu.memory_space<vmem>>, vector<32x32xf32>
    %c56 = arith.constant 56 : index
    %c0_27 = arith.constant 0 : index
    %45 = vector.load %arg2[%c56, %c0_27] : memref<912x32xf32, #tpu.memory_space<vmem>>, vector<1x32xf32>
    %cst_28 = arith.constant dense<0.000000e+00> : vector<4x32xf32>
    %46 = tpu.matmul %43, %44, %cst_28 {dimension_numbers = #tpu.dot_dimension_numbers<[1], [0], [0], [1], [0, 0, 1, 1], [], []>} : vector<4x32xf32>, vector<32x32xf32>, vector<4x32xf32> -> vector<4x32xf32>
    %47 = vector.broadcast %45 : vector<1x32xf32> to vector<4x32xf32>
    %48 = arith.addf %46, %47 : vector<4x32xf32>
    %cst_29 = arith.constant 0.000000e+00 : f32
    %49 = vector.broadcast %cst_29 : f32 to vector<4x32xf32>
    %50 = arith.cmpf ogt, %48, %49 : vector<4x32xf32>
    %51 = math.exp %48 : vector<4x32xf32>
    %cst_30 = arith.constant 1.000000e+00 : f32
    %52 = vector.broadcast %cst_30 : f32 to vector<4x32xf32>
    %53 = arith.subf %51, %52 : vector<4x32xf32>
    %54 = arith.select %50, %48, %53 : vector<4x32xi1>, vector<4x32xf32>
    %55 = arith.addf %43, %54 : vector<4x32xf32>
    %c64 = arith.constant 64 : index
    %c0_31 = arith.constant 0 : index
    %56 = vector.load %arg2[%c64, %c0_31] : memref<912x32xf32, #tpu.memory_space<vmem>>, vector<32x32xf32>
    %c96 = arith.constant 96 : index
    %c0_32 = arith.constant 0 : index
    %57 = vector.load %arg2[%c96, %c0_32] : memref<912x32xf32, #tpu.memory_space<vmem>>, vector<1x32xf32>
    %cst_33 = arith.constant dense<0.000000e+00> : vector<4x32xf32>
    %58 = tpu.matmul %55, %56, %cst_33 {dimension_numbers = #tpu.dot_dimension_numbers<[1], [0], [0], [1], [0, 0, 1, 1], [], []>} : vector<4x32xf32>, vector<32x32xf32>, vector<4x32xf32> -> vector<4x32xf32>
    %59 = vector.broadcast %57 : vector<1x32xf32> to vector<4x32xf32>
    %60 = arith.addf %58, %59 : vector<4x32xf32>
    %cst_34 = arith.constant 0.000000e+00 : f32
    %61 = vector.broadcast %cst_34 : f32 to vector<4x32xf32>
    %62 = arith.cmpf ogt, %60, %61 : vector<4x32xf32>
    %63 = math.exp %60 : vector<4x32xf32>
    %cst_35 = arith.constant 1.000000e+00 : f32
    %64 = vector.broadcast %cst_35 : f32 to vector<4x32xf32>
    %65 = arith.subf %63, %64 : vector<4x32xf32>
    %66 = arith.select %62, %60, %65 : vector<4x32xi1>, vector<4x32xf32>
    %67 = arith.addf %55, %66 : vector<4x32xf32>
    %c104 = arith.constant 104 : index
    %c0_36 = arith.constant 0 : index
    %68 = vector.load %arg2[%c104, %c0_36] : memref<912x32xf32, #tpu.memory_space<vmem>>, vector<32x8xf32>
    %c136 = arith.constant 136 : index
    %c0_37 = arith.constant 0 : index
    %69 = vector.load %arg2[%c136, %c0_37] : memref<912x32xf32, #tpu.memory_space<vmem>>, vector<1x8xf32>
    %cst_38 = arith.constant dense<0.000000e+00> : vector<4x8xf32>
    %70 = tpu.matmul %67, %68, %cst_38 {dimension_numbers = #tpu.dot_dimension_numbers<[1], [0], [0], [1], [0, 0, 1, 1], [], []>} : vector<4x32xf32>, vector<32x8xf32>, vector<4x8xf32> -> vector<4x8xf32>
    %71 = vector.broadcast %69 : vector<1x8xf32> to vector<4x8xf32>
    %72 = arith.addf %70, %71 : vector<4x8xf32>
    %73 = vector.extract_strided_slice %72 {offsets = [0, 0], sizes = [4, 4], strides = [1, 1]} : vector<4x8xf32> to vector<4x4xf32>
    %74 = vector.extract_strided_slice %72 {offsets = [0, 4], sizes = [4, 4], strides = [1, 1]} : vector<4x8xf32> to vector<4x4xf32>
    %cst_39 = arith.constant 1.000000e+00 : f32
    %75 = vector.broadcast %cst_39 : f32 to vector<4x4xf32>
    %76 = arith.mulf %74, %75 : vector<4x4xf32>
    %cst_40 = arith.constant 0.000000e+00 : f32
    %77 = vector.broadcast %cst_40 : f32 to vector<4x4xf32>
    %78 = arith.cmpf oge, %76, %77 : vector<4x4xf32>
    %cst_41 = arith.constant 1.000000e+00 : f32
    %cst_42 = arith.constant -1.000000e+00 : f32
    %79 = vector.broadcast %cst_41 : f32 to vector<4x4xf32>
    %80 = vector.broadcast %cst_42 : f32 to vector<4x4xf32>
    %81 = arith.select %78, %79, %80 : vector<4x4xi1>, vector<4x4xf32>
    %82 = math.absf %76 : vector<4x4xf32>
    %cst_43 = arith.constant 2.41421366 : f32
    %83 = vector.broadcast %cst_43 : f32 to vector<4x4xf32>
    %84 = arith.cmpf ogt, %82, %83 : vector<4x4xf32>
    %cst_44 = arith.constant -1.000000e+00 : f32
    %85 = vector.broadcast %cst_44 : f32 to vector<4x4xf32>
    %86 = arith.divf %85, %82 : vector<4x4xf32>
    %cst_45 = arith.constant 0.414213568 : f32
    %87 = vector.broadcast %cst_45 : f32 to vector<4x4xf32>
    %88 = arith.cmpf ogt, %82, %87 : vector<4x4xf32>
    %cst_46 = arith.constant 1.000000e+00 : f32
    %89 = vector.broadcast %cst_46 : f32 to vector<4x4xf32>
    %90 = arith.subf %82, %89 : vector<4x4xf32>
    %cst_47 = arith.constant 1.000000e+00 : f32
    %91 = vector.broadcast %cst_47 : f32 to vector<4x4xf32>
    %92 = arith.addf %82, %91 : vector<4x4xf32>
    %93 = arith.divf %90, %92 : vector<4x4xf32>
    %94 = arith.select %88, %93, %82 : vector<4x4xi1>, vector<4x4xf32>
    %95 = arith.select %84, %86, %94 : vector<4x4xi1>, vector<4x4xf32>
    %cst_48 = arith.constant 2.41421366 : f32
    %96 = vector.broadcast %cst_48 : f32 to vector<4x4xf32>
    %97 = arith.cmpf ogt, %82, %96 : vector<4x4xf32>
    %cst_49 = arith.constant 0.414213568 : f32
    %98 = vector.broadcast %cst_49 : f32 to vector<4x4xf32>
    %99 = arith.cmpf ogt, %82, %98 : vector<4x4xf32>
    %cst_50 = arith.constant 0.785398185 : f32
    %cst_51 = arith.constant 0.000000e+00 : f32
    %100 = vector.broadcast %cst_50 : f32 to vector<4x4xf32>
    %101 = vector.broadcast %cst_51 : f32 to vector<4x4xf32>
    %102 = arith.select %99, %100, %101 : vector<4x4xi1>, vector<4x4xf32>
    %cst_52 = arith.constant 1.57079637 : f32
    %103 = vector.broadcast %cst_52 : f32 to vector<4x4xf32>
    %104 = arith.select %97, %103, %102 : vector<4x4xi1>, vector<4x4xf32>
    %105 = arith.mulf %95, %95 : vector<4x4xf32>
    %cst_53 = arith.constant 0.0805374458 : f32
    %106 = vector.broadcast %cst_53 : f32 to vector<4x4xf32>
    %107 = arith.mulf %106, %105 : vector<4x4xf32>
    %cst_54 = arith.constant 0.138776854 : f32
    %108 = vector.broadcast %cst_54 : f32 to vector<4x4xf32>
    %109 = arith.subf %107, %108 : vector<4x4xf32>
    %110 = arith.mulf %109, %105 : vector<4x4xf32>
    %cst_55 = arith.constant 0.199777111 : f32
    %111 = vector.broadcast %cst_55 : f32 to vector<4x4xf32>
    %112 = arith.addf %110, %111 : vector<4x4xf32>
    %113 = arith.mulf %112, %105 : vector<4x4xf32>
    %cst_56 = arith.constant 0.333329499 : f32
    %114 = vector.broadcast %cst_56 : f32 to vector<4x4xf32>
    %115 = arith.subf %113, %114 : vector<4x4xf32>
    %116 = arith.mulf %115, %105 : vector<4x4xf32>
    %117 = arith.mulf %116, %95 : vector<4x4xf32>
    %118 = arith.addf %104, %117 : vector<4x4xf32>
    %119 = arith.addf %118, %95 : vector<4x4xf32>
    %120 = arith.mulf %81, %119 : vector<4x4xf32>
    %cst_57 = arith.constant 0.636619746 : f32
    %121 = vector.broadcast %cst_57 : f32 to vector<4x4xf32>
    %122 = arith.mulf %121, %120 : vector<4x4xf32>
    %123 = math.exp %122 : vector<4x4xf32>
    %124 = arith.mulf %2, %123 : vector<4x4xf32>
    %125 = arith.addf %124, %73 : vector<4x4xf32>
    %c144 = arith.constant 144 : index
    %c0_58 = arith.constant 0 : index
    %126 = vector.load %arg2[%c144, %c0_58] : memref<912x32xf32, #tpu.memory_space<vmem>>, vector<4x32xf32>
    %cst_59 = arith.constant dense<0.000000e+00> : vector<4x32xf32>
    %127 = tpu.matmul %125, %126, %cst_59 {dimension_numbers = #tpu.dot_dimension_numbers<[1], [0], [0], [1], [0, 0, 1, 1], [], []>} : vector<4x4xf32>, vector<4x32xf32>, vector<4x32xf32> -> vector<4x32xf32>
    %128 = arith.addf %127, %14 : vector<4x32xf32>
    %cst_60 = arith.constant 0.000000e+00 : f32
    %129 = vector.broadcast %cst_60 : f32 to vector<4x32xf32>
    %130 = arith.cmpf ogt, %128, %129 : vector<4x32xf32>
    %131 = math.exp %128 : vector<4x32xf32>
    %cst_61 = arith.constant 1.000000e+00 : f32
    %132 = vector.broadcast %cst_61 : f32 to vector<4x32xf32>
    %133 = arith.subf %131, %132 : vector<4x32xf32>
    %134 = arith.select %130, %128, %133 : vector<4x32xi1>, vector<4x32xf32>
    %c168 = arith.constant 168 : index
    %c0_62 = arith.constant 0 : index
    %135 = vector.load %arg2[%c168, %c0_62] : memref<912x32xf32, #tpu.memory_space<vmem>>, vector<32x32xf32>
    %c200 = arith.constant 200 : index
    %c0_63 = arith.constant 0 : index
    %136 = vector.load %arg2[%c200, %c0_63] : memref<912x32xf32, #tpu.memory_space<vmem>>, vector<1x32xf32>
    %cst_64 = arith.constant dense<0.000000e+00> : vector<4x32xf32>
    %137 = tpu.matmul %134, %135, %cst_64 {dimension_numbers = #tpu.dot_dimension_numbers<[1], [0], [0], [1], [0, 0, 1, 1], [], []>} : vector<4x32xf32>, vector<32x32xf32>, vector<4x32xf32> -> vector<4x32xf32>
    %138 = vector.broadcast %136 : vector<1x32xf32> to vector<4x32xf32>
    %139 = arith.addf %137, %138 : vector<4x32xf32>
    %cst_65 = arith.constant 0.000000e+00 : f32
    %140 = vector.broadcast %cst_65 : f32 to vector<4x32xf32>
    %141 = arith.cmpf ogt, %139, %140 : vector<4x32xf32>
    %142 = math.exp %139 : vector<4x32xf32>
    %cst_66 = arith.constant 1.000000e+00 : f32
    %143 = vector.broadcast %cst_66 : f32 to vector<4x32xf32>
    %144 = arith.subf %142, %143 : vector<4x32xf32>
    %145 = arith.select %141, %139, %144 : vector<4x32xi1>, vector<4x32xf32>
    %146 = arith.addf %134, %145 : vector<4x32xf32>
    %c208 = arith.constant 208 : index
    %c0_67 = arith.constant 0 : index
    %147 = vector.load %arg2[%c208, %c0_67] : memref<912x32xf32, #tpu.memory_space<vmem>>, vector<32x32xf32>
    %c240 = arith.constant 240 : index
    %c0_68 = arith.constant 0 : index
    %148 = vector.load %arg2[%c240, %c0_68] : memref<912x32xf32, #tpu.memory_space<vmem>>, vector<1x32xf32>
    %cst_69 = arith.constant dense<0.000000e+00> : vector<4x32xf32>
    %149 = tpu.matmul %146, %147, %cst_69 {dimension_numbers = #tpu.dot_dimension_numbers<[1], [0], [0], [1], [0, 0, 1, 1], [], []>} : vector<4x32xf32>, vector<32x32xf32>, vector<4x32xf32> -> vector<4x32xf32>
    %150 = vector.broadcast %148 : vector<1x32xf32> to vector<4x32xf32>
    %151 = arith.addf %149, %150 : vector<4x32xf32>
    %cst_70 = arith.constant 0.000000e+00 : f32
    %152 = vector.broadcast %cst_70 : f32 to vector<4x32xf32>
    %153 = arith.cmpf ogt, %151, %152 : vector<4x32xf32>
    %154 = math.exp %151 : vector<4x32xf32>
    %cst_71 = arith.constant 1.000000e+00 : f32
    %155 = vector.broadcast %cst_71 : f32 to vector<4x32xf32>
    %156 = arith.subf %154, %155 : vector<4x32xf32>
    %157 = arith.select %153, %151, %156 : vector<4x32xi1>, vector<4x32xf32>
    %158 = arith.addf %146, %157 : vector<4x32xf32>
    %c248 = arith.constant 248 : index
    %c0_72 = arith.constant 0 : index
    %159 = vector.load %arg2[%c248, %c0_72] : memref<912x32xf32, #tpu.memory_space<vmem>>, vector<32x8xf32>
    %c280 = arith.constant 280 : index
    %c0_73 = arith.constant 0 : index
    %160 = vector.load %arg2[%c280, %c0_73] : memref<912x32xf32, #tpu.memory_space<vmem>>, vector<1x8xf32>
    %cst_74 = arith.constant dense<0.000000e+00> : vector<4x8xf32>
    %161 = tpu.matmul %158, %159, %cst_74 {dimension_numbers = #tpu.dot_dimension_numbers<[1], [0], [0], [1], [0, 0, 1, 1], [], []>} : vector<4x32xf32>, vector<32x8xf32>, vector<4x8xf32> -> vector<4x8xf32>
    %162 = vector.broadcast %160 : vector<1x8xf32> to vector<4x8xf32>
    %163 = arith.addf %161, %162 : vector<4x8xf32>
    %164 = vector.extract_strided_slice %163 {offsets = [0, 0], sizes = [4, 4], strides = [1, 1]} : vector<4x8xf32> to vector<4x4xf32>
    %165 = vector.extract_strided_slice %163 {offsets = [0, 4], sizes = [4, 4], strides = [1, 1]} : vector<4x8xf32> to vector<4x4xf32>
    %cst_75 = arith.constant 1.000000e+00 : f32
    %166 = vector.broadcast %cst_75 : f32 to vector<4x4xf32>
    %167 = arith.mulf %165, %166 : vector<4x4xf32>
    %cst_76 = arith.constant 0.000000e+00 : f32
    %168 = vector.broadcast %cst_76 : f32 to vector<4x4xf32>
    %169 = arith.cmpf oge, %167, %168 : vector<4x4xf32>
    %cst_77 = arith.constant 1.000000e+00 : f32
    %cst_78 = arith.constant -1.000000e+00 : f32
    %170 = vector.broadcast %cst_77 : f32 to vector<4x4xf32>
    %171 = vector.broadcast %cst_78 : f32 to vector<4x4xf32>
    %172 = arith.select %169, %170, %171 : vector<4x4xi1>, vector<4x4xf32>
    %173 = math.absf %167 : vector<4x4xf32>
    %cst_79 = arith.constant 2.41421366 : f32
    %174 = vector.broadcast %cst_79 : f32 to vector<4x4xf32>
    %175 = arith.cmpf ogt, %173, %174 : vector<4x4xf32>
    %cst_80 = arith.constant -1.000000e+00 : f32
    %176 = vector.broadcast %cst_80 : f32 to vector<4x4xf32>
    %177 = arith.divf %176, %173 : vector<4x4xf32>
    %cst_81 = arith.constant 0.414213568 : f32
    %178 = vector.broadcast %cst_81 : f32 to vector<4x4xf32>
    %179 = arith.cmpf ogt, %173, %178 : vector<4x4xf32>
    %cst_82 = arith.constant 1.000000e+00 : f32
    %180 = vector.broadcast %cst_82 : f32 to vector<4x4xf32>
    %181 = arith.subf %173, %180 : vector<4x4xf32>
    %cst_83 = arith.constant 1.000000e+00 : f32
    %182 = vector.broadcast %cst_83 : f32 to vector<4x4xf32>
    %183 = arith.addf %173, %182 : vector<4x4xf32>
    %184 = arith.divf %181, %183 : vector<4x4xf32>
    %185 = arith.select %179, %184, %173 : vector<4x4xi1>, vector<4x4xf32>
    %186 = arith.select %175, %177, %185 : vector<4x4xi1>, vector<4x4xf32>
    %cst_84 = arith.constant 2.41421366 : f32
    %187 = vector.broadcast %cst_84 : f32 to vector<4x4xf32>
    %188 = arith.cmpf ogt, %173, %187 : vector<4x4xf32>
    %cst_85 = arith.constant 0.414213568 : f32
    %189 = vector.broadcast %cst_85 : f32 to vector<4x4xf32>
    %190 = arith.cmpf ogt, %173, %189 : vector<4x4xf32>
    %cst_86 = arith.constant 0.785398185 : f32
    %cst_87 = arith.constant 0.000000e+00 : f32
    %191 = vector.broadcast %cst_86 : f32 to vector<4x4xf32>
    %192 = vector.broadcast %cst_87 : f32 to vector<4x4xf32>
    %193 = arith.select %190, %191, %192 : vector<4x4xi1>, vector<4x4xf32>
    %cst_88 = arith.constant 1.57079637 : f32
    %194 = vector.broadcast %cst_88 : f32 to vector<4x4xf32>
    %195 = arith.select %188, %194, %193 : vector<4x4xi1>, vector<4x4xf32>
    %196 = arith.mulf %186, %186 : vector<4x4xf32>
    %cst_89 = arith.constant 0.0805374458 : f32
    %197 = vector.broadcast %cst_89 : f32 to vector<4x4xf32>
    %198 = arith.mulf %197, %196 : vector<4x4xf32>
    %cst_90 = arith.constant 0.138776854 : f32
    %199 = vector.broadcast %cst_90 : f32 to vector<4x4xf32>
    %200 = arith.subf %198, %199 : vector<4x4xf32>
    %201 = arith.mulf %200, %196 : vector<4x4xf32>
    %cst_91 = arith.constant 0.199777111 : f32
    %202 = vector.broadcast %cst_91 : f32 to vector<4x4xf32>
    %203 = arith.addf %201, %202 : vector<4x4xf32>
    %204 = arith.mulf %203, %196 : vector<4x4xf32>
    %cst_92 = arith.constant 0.333329499 : f32
    %205 = vector.broadcast %cst_92 : f32 to vector<4x4xf32>
    %206 = arith.subf %204, %205 : vector<4x4xf32>
    %207 = arith.mulf %206, %196 : vector<4x4xf32>
    %208 = arith.mulf %207, %186 : vector<4x4xf32>
    %209 = arith.addf %195, %208 : vector<4x4xf32>
    %210 = arith.addf %209, %186 : vector<4x4xf32>
    %211 = arith.mulf %172, %210 : vector<4x4xf32>
    %cst_93 = arith.constant 0.636619746 : f32
    %212 = vector.broadcast %cst_93 : f32 to vector<4x4xf32>
    %213 = arith.mulf %212, %211 : vector<4x4xf32>
    %214 = math.exp %213 : vector<4x4xf32>
    %215 = arith.mulf %3, %214 : vector<4x4xf32>
    %216 = arith.addf %215, %164 : vector<4x4xf32>
    %cst_94 = arith.constant dense<0.000000e+00> : vector<4xf32>
    %217 = vector.multi_reduction <add>, %122, %cst_94 [1] : vector<4x4xf32> to vector<4xf32>
    %218 = vector.shape_cast %217 : vector<4xf32> to vector<4x1xf32>
    %cst_95 = arith.constant dense<0.000000e+00> : vector<4xf32>
    %219 = vector.multi_reduction <add>, %213, %cst_95 [1] : vector<4x4xf32> to vector<4xf32>
    %220 = vector.shape_cast %219 : vector<4xf32> to vector<4x1xf32>
    %221 = arith.addf %218, %220 : vector<4x1xf32>
    %222 = arith.addf %4, %221 : vector<4x1xf32>
    %c864 = arith.constant 864 : index
    %c0_96 = arith.constant 0 : index
    %223 = vector.load %arg2[%c864, %c0_96] : memref<912x32xf32, #tpu.memory_space<vmem>>, vector<4x8xf32>
    %c872 = arith.constant 872 : index
    %c0_97 = arith.constant 0 : index
    %224 = vector.load %arg2[%c872, %c0_97] : memref<912x32xf32, #tpu.memory_space<vmem>>, vector<4x8xf32>
    %cst_98 = arith.constant dense<0.000000e+00> : vector<4x8xf32>
    %225 = tpu.matmul %125, %223, %cst_98 {dimension_numbers = #tpu.dot_dimension_numbers<[1], [0], [0], [1], [0, 0, 1, 1], [], []>} : vector<4x4xf32>, vector<4x8xf32>, vector<4x8xf32> -> vector<4x8xf32>
    %cst_99 = arith.constant dense<0.000000e+00> : vector<4x8xf32>
    %226 = tpu.matmul %216, %224, %cst_99 {dimension_numbers = #tpu.dot_dimension_numbers<[1], [0], [0], [1], [0, 0, 1, 1], [], []>} : vector<4x4xf32>, vector<4x8xf32>, vector<4x8xf32> -> vector<4x8xf32>
    %227 = arith.addf %225, %226 : vector<4x8xf32>
    %228 = vector.extract_strided_slice %227 {offsets = [0, 0], sizes = [4, 4], strides = [1, 1]} : vector<4x8xf32> to vector<4x4xf32>
    %229 = vector.extract_strided_slice %227 {offsets = [0, 4], sizes = [4, 4], strides = [1, 1]} : vector<4x8xf32> to vector<4x4xf32>
    %c288 = arith.constant 288 : index
    %c0_100 = arith.constant 0 : index
    %230 = vector.load %arg2[%c288, %c0_100] : memref<912x32xf32, #tpu.memory_space<vmem>>, vector<4x32xf32>
    %cst_101 = arith.constant dense<0.000000e+00> : vector<4x32xf32>
    %231 = tpu.matmul %229, %230, %cst_101 {dimension_numbers = #tpu.dot_dimension_numbers<[1], [0], [0], [1], [0, 0, 1, 1], [], []>} : vector<4x4xf32>, vector<4x32xf32>, vector<4x32xf32> -> vector<4x32xf32>
    %232 = arith.addf %231, %19 : vector<4x32xf32>
    %cst_102 = arith.constant 0.000000e+00 : f32
    %233 = vector.broadcast %cst_102 : f32 to vector<4x32xf32>
    %234 = arith.cmpf ogt, %232, %233 : vector<4x32xf32>
    %235 = math.exp %232 : vector<4x32xf32>
    %cst_103 = arith.constant 1.000000e+00 : f32
    %236 = vector.broadcast %cst_103 : f32 to vector<4x32xf32>
    %237 = arith.subf %235, %236 : vector<4x32xf32>
    %238 = arith.select %234, %232, %237 : vector<4x32xi1>, vector<4x32xf32>
    %c312 = arith.constant 312 : index
    %c0_104 = arith.constant 0 : index
    %239 = vector.load %arg2[%c312, %c0_104] : memref<912x32xf32, #tpu.memory_space<vmem>>, vector<32x32xf32>
    %c344 = arith.constant 344 : index
    %c0_105 = arith.constant 0 : index
    %240 = vector.load %arg2[%c344, %c0_105] : memref<912x32xf32, #tpu.memory_space<vmem>>, vector<1x32xf32>
    %cst_106 = arith.constant dense<0.000000e+00> : vector<4x32xf32>
    %241 = tpu.matmul %238, %239, %cst_106 {dimension_numbers = #tpu.dot_dimension_numbers<[1], [0], [0], [1], [0, 0, 1, 1], [], []>} : vector<4x32xf32>, vector<32x32xf32>, vector<4x32xf32> -> vector<4x32xf32>
    %242 = vector.broadcast %240 : vector<1x32xf32> to vector<4x32xf32>
    %243 = arith.addf %241, %242 : vector<4x32xf32>
    %cst_107 = arith.constant 0.000000e+00 : f32
    %244 = vector.broadcast %cst_107 : f32 to vector<4x32xf32>
    %245 = arith.cmpf ogt, %243, %244 : vector<4x32xf32>
    %246 = math.exp %243 : vector<4x32xf32>
    %cst_108 = arith.constant 1.000000e+00 : f32
    %247 = vector.broadcast %cst_108 : f32 to vector<4x32xf32>
    %248 = arith.subf %246, %247 : vector<4x32xf32>
    %249 = arith.select %245, %243, %248 : vector<4x32xi1>, vector<4x32xf32>
    %250 = arith.addf %238, %249 : vector<4x32xf32>
    %c352 = arith.constant 352 : index
    %c0_109 = arith.constant 0 : index
    %251 = vector.load %arg2[%c352, %c0_109] : memref<912x32xf32, #tpu.memory_space<vmem>>, vector<32x32xf32>
    %c384 = arith.constant 384 : index
    %c0_110 = arith.constant 0 : index
    %252 = vector.load %arg2[%c384, %c0_110] : memref<912x32xf32, #tpu.memory_space<vmem>>, vector<1x32xf32>
    %cst_111 = arith.constant dense<0.000000e+00> : vector<4x32xf32>
    %253 = tpu.matmul %250, %251, %cst_111 {dimension_numbers = #tpu.dot_dimension_numbers<[1], [0], [0], [1], [0, 0, 1, 1], [], []>} : vector<4x32xf32>, vector<32x32xf32>, vector<4x32xf32> -> vector<4x32xf32>
    %254 = vector.broadcast %252 : vector<1x32xf32> to vector<4x32xf32>
    %255 = arith.addf %253, %254 : vector<4x32xf32>
    %cst_112 = arith.constant 0.000000e+00 : f32
    %256 = vector.broadcast %cst_112 : f32 to vector<4x32xf32>
    %257 = arith.cmpf ogt, %255, %256 : vector<4x32xf32>
    %258 = math.exp %255 : vector<4x32xf32>
    %cst_113 = arith.constant 1.000000e+00 : f32
    %259 = vector.broadcast %cst_113 : f32 to vector<4x32xf32>
    %260 = arith.subf %258, %259 : vector<4x32xf32>
    %261 = arith.select %257, %255, %260 : vector<4x32xi1>, vector<4x32xf32>
    %262 = arith.addf %250, %261 : vector<4x32xf32>
    %c392 = arith.constant 392 : index
    %c0_114 = arith.constant 0 : index
    %263 = vector.load %arg2[%c392, %c0_114] : memref<912x32xf32, #tpu.memory_space<vmem>>, vector<32x8xf32>
    %c424 = arith.constant 424 : index
    %c0_115 = arith.constant 0 : index
    %264 = vector.load %arg2[%c424, %c0_115] : memref<912x32xf32, #tpu.memory_space<vmem>>, vector<1x8xf32>
    %cst_116 = arith.constant dense<0.000000e+00> : vector<4x8xf32>
    %265 = tpu.matmul %262, %263, %cst_116 {dimension_numbers = #tpu.dot_dimension_numbers<[1], [0], [0], [1], [0, 0, 1, 1], [], []>} : vector<4x32xf32>, vector<32x8xf32>, vector<4x8xf32> -> vector<4x8xf32>
    %266 = vector.broadcast %264 : vector<1x8xf32> to vector<4x8xf32>
    %267 = arith.addf %265, %266 : vector<4x8xf32>
    %268 = vector.extract_strided_slice %267 {offsets = [0, 0], sizes = [4, 4], strides = [1, 1]} : vector<4x8xf32> to vector<4x4xf32>
    %269 = vector.extract_strided_slice %267 {offsets = [0, 4], sizes = [4, 4], strides = [1, 1]} : vector<4x8xf32> to vector<4x4xf32>
    %cst_117 = arith.constant 1.000000e+00 : f32
    %270 = vector.broadcast %cst_117 : f32 to vector<4x4xf32>
    %271 = arith.mulf %269, %270 : vector<4x4xf32>
    %cst_118 = arith.constant 0.000000e+00 : f32
    %272 = vector.broadcast %cst_118 : f32 to vector<4x4xf32>
    %273 = arith.cmpf oge, %271, %272 : vector<4x4xf32>
    %cst_119 = arith.constant 1.000000e+00 : f32
    %cst_120 = arith.constant -1.000000e+00 : f32
    %274 = vector.broadcast %cst_119 : f32 to vector<4x4xf32>
    %275 = vector.broadcast %cst_120 : f32 to vector<4x4xf32>
    %276 = arith.select %273, %274, %275 : vector<4x4xi1>, vector<4x4xf32>
    %277 = math.absf %271 : vector<4x4xf32>
    %cst_121 = arith.constant 2.41421366 : f32
    %278 = vector.broadcast %cst_121 : f32 to vector<4x4xf32>
    %279 = arith.cmpf ogt, %277, %278 : vector<4x4xf32>
    %cst_122 = arith.constant -1.000000e+00 : f32
    %280 = vector.broadcast %cst_122 : f32 to vector<4x4xf32>
    %281 = arith.divf %280, %277 : vector<4x4xf32>
    %cst_123 = arith.constant 0.414213568 : f32
    %282 = vector.broadcast %cst_123 : f32 to vector<4x4xf32>
    %283 = arith.cmpf ogt, %277, %282 : vector<4x4xf32>
    %cst_124 = arith.constant 1.000000e+00 : f32
    %284 = vector.broadcast %cst_124 : f32 to vector<4x4xf32>
    %285 = arith.subf %277, %284 : vector<4x4xf32>
    %cst_125 = arith.constant 1.000000e+00 : f32
    %286 = vector.broadcast %cst_125 : f32 to vector<4x4xf32>
    %287 = arith.addf %277, %286 : vector<4x4xf32>
    %288 = arith.divf %285, %287 : vector<4x4xf32>
    %289 = arith.select %283, %288, %277 : vector<4x4xi1>, vector<4x4xf32>
    %290 = arith.select %279, %281, %289 : vector<4x4xi1>, vector<4x4xf32>
    %cst_126 = arith.constant 2.41421366 : f32
    %291 = vector.broadcast %cst_126 : f32 to vector<4x4xf32>
    %292 = arith.cmpf ogt, %277, %291 : vector<4x4xf32>
    %cst_127 = arith.constant 0.414213568 : f32
    %293 = vector.broadcast %cst_127 : f32 to vector<4x4xf32>
    %294 = arith.cmpf ogt, %277, %293 : vector<4x4xf32>
    %cst_128 = arith.constant 0.785398185 : f32
    %cst_129 = arith.constant 0.000000e+00 : f32
    %295 = vector.broadcast %cst_128 : f32 to vector<4x4xf32>
    %296 = vector.broadcast %cst_129 : f32 to vector<4x4xf32>
    %297 = arith.select %294, %295, %296 : vector<4x4xi1>, vector<4x4xf32>
    %cst_130 = arith.constant 1.57079637 : f32
    %298 = vector.broadcast %cst_130 : f32 to vector<4x4xf32>
    %299 = arith.select %292, %298, %297 : vector<4x4xi1>, vector<4x4xf32>
    %300 = arith.mulf %290, %290 : vector<4x4xf32>
    %cst_131 = arith.constant 0.0805374458 : f32
    %301 = vector.broadcast %cst_131 : f32 to vector<4x4xf32>
    %302 = arith.mulf %301, %300 : vector<4x4xf32>
    %cst_132 = arith.constant 0.138776854 : f32
    %303 = vector.broadcast %cst_132 : f32 to vector<4x4xf32>
    %304 = arith.subf %302, %303 : vector<4x4xf32>
    %305 = arith.mulf %304, %300 : vector<4x4xf32>
    %cst_133 = arith.constant 0.199777111 : f32
    %306 = vector.broadcast %cst_133 : f32 to vector<4x4xf32>
    %307 = arith.addf %305, %306 : vector<4x4xf32>
    %308 = arith.mulf %307, %300 : vector<4x4xf32>
    %cst_134 = arith.constant 0.333329499 : f32
    %309 = vector.broadcast %cst_134 : f32 to vector<4x4xf32>
    %310 = arith.subf %308, %309 : vector<4x4xf32>
    %311 = arith.mulf %310, %300 : vector<4x4xf32>
    %312 = arith.mulf %311, %290 : vector<4x4xf32>
    %313 = arith.addf %299, %312 : vector<4x4xf32>
    %314 = arith.addf %313, %290 : vector<4x4xf32>
    %315 = arith.mulf %276, %314 : vector<4x4xf32>
    %cst_135 = arith.constant 0.636619746 : f32
    %316 = vector.broadcast %cst_135 : f32 to vector<4x4xf32>
    %317 = arith.mulf %316, %315 : vector<4x4xf32>
    %318 = math.exp %317 : vector<4x4xf32>
    %319 = arith.mulf %228, %318 : vector<4x4xf32>
    %320 = arith.addf %319, %268 : vector<4x4xf32>
    %c432 = arith.constant 432 : index
    %c0_136 = arith.constant 0 : index
    %321 = vector.load %arg2[%c432, %c0_136] : memref<912x32xf32, #tpu.memory_space<vmem>>, vector<4x32xf32>
    %cst_137 = arith.constant dense<0.000000e+00> : vector<4x32xf32>
    %322 = tpu.matmul %320, %321, %cst_137 {dimension_numbers = #tpu.dot_dimension_numbers<[1], [0], [0], [1], [0, 0, 1, 1], [], []>} : vector<4x4xf32>, vector<4x32xf32>, vector<4x32xf32> -> vector<4x32xf32>
    %323 = arith.addf %322, %24 : vector<4x32xf32>
    %cst_138 = arith.constant 0.000000e+00 : f32
    %324 = vector.broadcast %cst_138 : f32 to vector<4x32xf32>
    %325 = arith.cmpf ogt, %323, %324 : vector<4x32xf32>
    %326 = math.exp %323 : vector<4x32xf32>
    %cst_139 = arith.constant 1.000000e+00 : f32
    %327 = vector.broadcast %cst_139 : f32 to vector<4x32xf32>
    %328 = arith.subf %326, %327 : vector<4x32xf32>
    %329 = arith.select %325, %323, %328 : vector<4x32xi1>, vector<4x32xf32>
    %c456 = arith.constant 456 : index
    %c0_140 = arith.constant 0 : index
    %330 = vector.load %arg2[%c456, %c0_140] : memref<912x32xf32, #tpu.memory_space<vmem>>, vector<32x32xf32>
    %c488 = arith.constant 488 : index
    %c0_141 = arith.constant 0 : index
    %331 = vector.load %arg2[%c488, %c0_141] : memref<912x32xf32, #tpu.memory_space<vmem>>, vector<1x32xf32>
    %cst_142 = arith.constant dense<0.000000e+00> : vector<4x32xf32>
    %332 = tpu.matmul %329, %330, %cst_142 {dimension_numbers = #tpu.dot_dimension_numbers<[1], [0], [0], [1], [0, 0, 1, 1], [], []>} : vector<4x32xf32>, vector<32x32xf32>, vector<4x32xf32> -> vector<4x32xf32>
    %333 = vector.broadcast %331 : vector<1x32xf32> to vector<4x32xf32>
    %334 = arith.addf %332, %333 : vector<4x32xf32>
    %cst_143 = arith.constant 0.000000e+00 : f32
    %335 = vector.broadcast %cst_143 : f32 to vector<4x32xf32>
    %336 = arith.cmpf ogt, %334, %335 : vector<4x32xf32>
    %337 = math.exp %334 : vector<4x32xf32>
    %cst_144 = arith.constant 1.000000e+00 : f32
    %338 = vector.broadcast %cst_144 : f32 to vector<4x32xf32>
    %339 = arith.subf %337, %338 : vector<4x32xf32>
    %340 = arith.select %336, %334, %339 : vector<4x32xi1>, vector<4x32xf32>
    %341 = arith.addf %329, %340 : vector<4x32xf32>
    %c496 = arith.constant 496 : index
    %c0_145 = arith.constant 0 : index
    %342 = vector.load %arg2[%c496, %c0_145] : memref<912x32xf32, #tpu.memory_space<vmem>>, vector<32x32xf32>
    %c528 = arith.constant 528 : index
    %c0_146 = arith.constant 0 : index
    %343 = vector.load %arg2[%c528, %c0_146] : memref<912x32xf32, #tpu.memory_space<vmem>>, vector<1x32xf32>
    %cst_147 = arith.constant dense<0.000000e+00> : vector<4x32xf32>
    %344 = tpu.matmul %341, %342, %cst_147 {dimension_numbers = #tpu.dot_dimension_numbers<[1], [0], [0], [1], [0, 0, 1, 1], [], []>} : vector<4x32xf32>, vector<32x32xf32>, vector<4x32xf32> -> vector<4x32xf32>
    %345 = vector.broadcast %343 : vector<1x32xf32> to vector<4x32xf32>
    %346 = arith.addf %344, %345 : vector<4x32xf32>
    %cst_148 = arith.constant 0.000000e+00 : f32
    %347 = vector.broadcast %cst_148 : f32 to vector<4x32xf32>
    %348 = arith.cmpf ogt, %346, %347 : vector<4x32xf32>
    %349 = math.exp %346 : vector<4x32xf32>
    %cst_149 = arith.constant 1.000000e+00 : f32
    %350 = vector.broadcast %cst_149 : f32 to vector<4x32xf32>
    %351 = arith.subf %349, %350 : vector<4x32xf32>
    %352 = arith.select %348, %346, %351 : vector<4x32xi1>, vector<4x32xf32>
    %353 = arith.addf %341, %352 : vector<4x32xf32>
    %c536 = arith.constant 536 : index
    %c0_150 = arith.constant 0 : index
    %354 = vector.load %arg2[%c536, %c0_150] : memref<912x32xf32, #tpu.memory_space<vmem>>, vector<32x8xf32>
    %c568 = arith.constant 568 : index
    %c0_151 = arith.constant 0 : index
    %355 = vector.load %arg2[%c568, %c0_151] : memref<912x32xf32, #tpu.memory_space<vmem>>, vector<1x8xf32>
    %cst_152 = arith.constant dense<0.000000e+00> : vector<4x8xf32>
    %356 = tpu.matmul %353, %354, %cst_152 {dimension_numbers = #tpu.dot_dimension_numbers<[1], [0], [0], [1], [0, 0, 1, 1], [], []>} : vector<4x32xf32>, vector<32x8xf32>, vector<4x8xf32> -> vector<4x8xf32>
    %357 = vector.broadcast %355 : vector<1x8xf32> to vector<4x8xf32>
    %358 = arith.addf %356, %357 : vector<4x8xf32>
    %359 = vector.extract_strided_slice %358 {offsets = [0, 0], sizes = [4, 4], strides = [1, 1]} : vector<4x8xf32> to vector<4x4xf32>
    %360 = vector.extract_strided_slice %358 {offsets = [0, 4], sizes = [4, 4], strides = [1, 1]} : vector<4x8xf32> to vector<4x4xf32>
    %cst_153 = arith.constant 1.000000e+00 : f32
    %361 = vector.broadcast %cst_153 : f32 to vector<4x4xf32>
    %362 = arith.mulf %360, %361 : vector<4x4xf32>
    %cst_154 = arith.constant 0.000000e+00 : f32
    %363 = vector.broadcast %cst_154 : f32 to vector<4x4xf32>
    %364 = arith.cmpf oge, %362, %363 : vector<4x4xf32>
    %cst_155 = arith.constant 1.000000e+00 : f32
    %cst_156 = arith.constant -1.000000e+00 : f32
    %365 = vector.broadcast %cst_155 : f32 to vector<4x4xf32>
    %366 = vector.broadcast %cst_156 : f32 to vector<4x4xf32>
    %367 = arith.select %364, %365, %366 : vector<4x4xi1>, vector<4x4xf32>
    %368 = math.absf %362 : vector<4x4xf32>
    %cst_157 = arith.constant 2.41421366 : f32
    %369 = vector.broadcast %cst_157 : f32 to vector<4x4xf32>
    %370 = arith.cmpf ogt, %368, %369 : vector<4x4xf32>
    %cst_158 = arith.constant -1.000000e+00 : f32
    %371 = vector.broadcast %cst_158 : f32 to vector<4x4xf32>
    %372 = arith.divf %371, %368 : vector<4x4xf32>
    %cst_159 = arith.constant 0.414213568 : f32
    %373 = vector.broadcast %cst_159 : f32 to vector<4x4xf32>
    %374 = arith.cmpf ogt, %368, %373 : vector<4x4xf32>
    %cst_160 = arith.constant 1.000000e+00 : f32
    %375 = vector.broadcast %cst_160 : f32 to vector<4x4xf32>
    %376 = arith.subf %368, %375 : vector<4x4xf32>
    %cst_161 = arith.constant 1.000000e+00 : f32
    %377 = vector.broadcast %cst_161 : f32 to vector<4x4xf32>
    %378 = arith.addf %368, %377 : vector<4x4xf32>
    %379 = arith.divf %376, %378 : vector<4x4xf32>
    %380 = arith.select %374, %379, %368 : vector<4x4xi1>, vector<4x4xf32>
    %381 = arith.select %370, %372, %380 : vector<4x4xi1>, vector<4x4xf32>
    %cst_162 = arith.constant 2.41421366 : f32
    %382 = vector.broadcast %cst_162 : f32 to vector<4x4xf32>
    %383 = arith.cmpf ogt, %368, %382 : vector<4x4xf32>
    %cst_163 = arith.constant 0.414213568 : f32
    %384 = vector.broadcast %cst_163 : f32 to vector<4x4xf32>
    %385 = arith.cmpf ogt, %368, %384 : vector<4x4xf32>
    %cst_164 = arith.constant 0.785398185 : f32
    %cst_165 = arith.constant 0.000000e+00 : f32
    %386 = vector.broadcast %cst_164 : f32 to vector<4x4xf32>
    %387 = vector.broadcast %cst_165 : f32 to vector<4x4xf32>
    %388 = arith.select %385, %386, %387 : vector<4x4xi1>, vector<4x4xf32>
    %cst_166 = arith.constant 1.57079637 : f32
    %389 = vector.broadcast %cst_166 : f32 to vector<4x4xf32>
    %390 = arith.select %383, %389, %388 : vector<4x4xi1>, vector<4x4xf32>
    %391 = arith.mulf %381, %381 : vector<4x4xf32>
    %cst_167 = arith.constant 0.0805374458 : f32
    %392 = vector.broadcast %cst_167 : f32 to vector<4x4xf32>
    %393 = arith.mulf %392, %391 : vector<4x4xf32>
    %cst_168 = arith.constant 0.138776854 : f32
    %394 = vector.broadcast %cst_168 : f32 to vector<4x4xf32>
    %395 = arith.subf %393, %394 : vector<4x4xf32>
    %396 = arith.mulf %395, %391 : vector<4x4xf32>
    %cst_169 = arith.constant 0.199777111 : f32
    %397 = vector.broadcast %cst_169 : f32 to vector<4x4xf32>
    %398 = arith.addf %396, %397 : vector<4x4xf32>
    %399 = arith.mulf %398, %391 : vector<4x4xf32>
    %cst_170 = arith.constant 0.333329499 : f32
    %400 = vector.broadcast %cst_170 : f32 to vector<4x4xf32>
    %401 = arith.subf %399, %400 : vector<4x4xf32>
    %402 = arith.mulf %401, %391 : vector<4x4xf32>
    %403 = arith.mulf %402, %381 : vector<4x4xf32>
    %404 = arith.addf %390, %403 : vector<4x4xf32>
    %405 = arith.addf %404, %381 : vector<4x4xf32>
    %406 = arith.mulf %367, %405 : vector<4x4xf32>
    %cst_171 = arith.constant 0.636619746 : f32
    %407 = vector.broadcast %cst_171 : f32 to vector<4x4xf32>
    %408 = arith.mulf %407, %406 : vector<4x4xf32>
    %409 = math.exp %408 : vector<4x4xf32>
    %410 = arith.mulf %229, %409 : vector<4x4xf32>
    %411 = arith.addf %410, %359 : vector<4x4xf32>
    %cst_172 = arith.constant dense<0.000000e+00> : vector<4xf32>
    %412 = vector.multi_reduction <add>, %317, %cst_172 [1] : vector<4x4xf32> to vector<4xf32>
    %413 = vector.shape_cast %412 : vector<4xf32> to vector<4x1xf32>
    %cst_173 = arith.constant dense<0.000000e+00> : vector<4xf32>
    %414 = vector.multi_reduction <add>, %408, %cst_173 [1] : vector<4x4xf32> to vector<4xf32>
    %415 = vector.shape_cast %414 : vector<4xf32> to vector<4x1xf32>
    %416 = arith.addf %413, %415 : vector<4x1xf32>
    %417 = arith.addf %222, %416 : vector<4x1xf32>
    %c880 = arith.constant 880 : index
    %c0_174 = arith.constant 0 : index
    %418 = vector.load %arg2[%c880, %c0_174] : memref<912x32xf32, #tpu.memory_space<vmem>>, vector<4x8xf32>
    %c888 = arith.constant 888 : index
    %c0_175 = arith.constant 0 : index
    %419 = vector.load %arg2[%c888, %c0_175] : memref<912x32xf32, #tpu.memory_space<vmem>>, vector<4x8xf32>
    %cst_176 = arith.constant dense<0.000000e+00> : vector<4x8xf32>
    %420 = tpu.matmul %320, %418, %cst_176 {dimension_numbers = #tpu.dot_dimension_numbers<[1], [0], [0], [1], [0, 0, 1, 1], [], []>} : vector<4x4xf32>, vector<4x8xf32>, vector<4x8xf32> -> vector<4x8xf32>
    %cst_177 = arith.constant dense<0.000000e+00> : vector<4x8xf32>
    %421 = tpu.matmul %411, %419, %cst_177 {dimension_numbers = #tpu.dot_dimension_numbers<[1], [0], [0], [1], [0, 0, 1, 1], [], []>} : vector<4x4xf32>, vector<4x8xf32>, vector<4x8xf32> -> vector<4x8xf32>
    %422 = arith.addf %420, %421 : vector<4x8xf32>
    %423 = vector.extract_strided_slice %422 {offsets = [0, 0], sizes = [4, 4], strides = [1, 1]} : vector<4x8xf32> to vector<4x4xf32>
    %424 = vector.extract_strided_slice %422 {offsets = [0, 4], sizes = [4, 4], strides = [1, 1]} : vector<4x8xf32> to vector<4x4xf32>
    %c576 = arith.constant 576 : index
    %c0_178 = arith.constant 0 : index
    %425 = vector.load %arg2[%c576, %c0_178] : memref<912x32xf32, #tpu.memory_space<vmem>>, vector<4x32xf32>
    %cst_179 = arith.constant dense<0.000000e+00> : vector<4x32xf32>
    %426 = tpu.matmul %424, %425, %cst_179 {dimension_numbers = #tpu.dot_dimension_numbers<[1], [0], [0], [1], [0, 0, 1, 1], [], []>} : vector<4x4xf32>, vector<4x32xf32>, vector<4x32xf32> -> vector<4x32xf32>
    %427 = arith.addf %426, %29 : vector<4x32xf32>
    %cst_180 = arith.constant 0.000000e+00 : f32
    %428 = vector.broadcast %cst_180 : f32 to vector<4x32xf32>
    %429 = arith.cmpf ogt, %427, %428 : vector<4x32xf32>
    %430 = math.exp %427 : vector<4x32xf32>
    %cst_181 = arith.constant 1.000000e+00 : f32
    %431 = vector.broadcast %cst_181 : f32 to vector<4x32xf32>
    %432 = arith.subf %430, %431 : vector<4x32xf32>
    %433 = arith.select %429, %427, %432 : vector<4x32xi1>, vector<4x32xf32>
    %c600 = arith.constant 600 : index
    %c0_182 = arith.constant 0 : index
    %434 = vector.load %arg2[%c600, %c0_182] : memref<912x32xf32, #tpu.memory_space<vmem>>, vector<32x32xf32>
    %c632 = arith.constant 632 : index
    %c0_183 = arith.constant 0 : index
    %435 = vector.load %arg2[%c632, %c0_183] : memref<912x32xf32, #tpu.memory_space<vmem>>, vector<1x32xf32>
    %cst_184 = arith.constant dense<0.000000e+00> : vector<4x32xf32>
    %436 = tpu.matmul %433, %434, %cst_184 {dimension_numbers = #tpu.dot_dimension_numbers<[1], [0], [0], [1], [0, 0, 1, 1], [], []>} : vector<4x32xf32>, vector<32x32xf32>, vector<4x32xf32> -> vector<4x32xf32>
    %437 = vector.broadcast %435 : vector<1x32xf32> to vector<4x32xf32>
    %438 = arith.addf %436, %437 : vector<4x32xf32>
    %cst_185 = arith.constant 0.000000e+00 : f32
    %439 = vector.broadcast %cst_185 : f32 to vector<4x32xf32>
    %440 = arith.cmpf ogt, %438, %439 : vector<4x32xf32>
    %441 = math.exp %438 : vector<4x32xf32>
    %cst_186 = arith.constant 1.000000e+00 : f32
    %442 = vector.broadcast %cst_186 : f32 to vector<4x32xf32>
    %443 = arith.subf %441, %442 : vector<4x32xf32>
    %444 = arith.select %440, %438, %443 : vector<4x32xi1>, vector<4x32xf32>
    %445 = arith.addf %433, %444 : vector<4x32xf32>
    %c640 = arith.constant 640 : index
    %c0_187 = arith.constant 0 : index
    %446 = vector.load %arg2[%c640, %c0_187] : memref<912x32xf32, #tpu.memory_space<vmem>>, vector<32x32xf32>
    %c672 = arith.constant 672 : index
    %c0_188 = arith.constant 0 : index
    %447 = vector.load %arg2[%c672, %c0_188] : memref<912x32xf32, #tpu.memory_space<vmem>>, vector<1x32xf32>
    %cst_189 = arith.constant dense<0.000000e+00> : vector<4x32xf32>
    %448 = tpu.matmul %445, %446, %cst_189 {dimension_numbers = #tpu.dot_dimension_numbers<[1], [0], [0], [1], [0, 0, 1, 1], [], []>} : vector<4x32xf32>, vector<32x32xf32>, vector<4x32xf32> -> vector<4x32xf32>
    %449 = vector.broadcast %447 : vector<1x32xf32> to vector<4x32xf32>
    %450 = arith.addf %448, %449 : vector<4x32xf32>
    %cst_190 = arith.constant 0.000000e+00 : f32
    %451 = vector.broadcast %cst_190 : f32 to vector<4x32xf32>
    %452 = arith.cmpf ogt, %450, %451 : vector<4x32xf32>
    %453 = math.exp %450 : vector<4x32xf32>
    %cst_191 = arith.constant 1.000000e+00 : f32
    %454 = vector.broadcast %cst_191 : f32 to vector<4x32xf32>
    %455 = arith.subf %453, %454 : vector<4x32xf32>
    %456 = arith.select %452, %450, %455 : vector<4x32xi1>, vector<4x32xf32>
    %457 = arith.addf %445, %456 : vector<4x32xf32>
    %c680 = arith.constant 680 : index
    %c0_192 = arith.constant 0 : index
    %458 = vector.load %arg2[%c680, %c0_192] : memref<912x32xf32, #tpu.memory_space<vmem>>, vector<32x8xf32>
    %c712 = arith.constant 712 : index
    %c0_193 = arith.constant 0 : index
    %459 = vector.load %arg2[%c712, %c0_193] : memref<912x32xf32, #tpu.memory_space<vmem>>, vector<1x8xf32>
    %cst_194 = arith.constant dense<0.000000e+00> : vector<4x8xf32>
    %460 = tpu.matmul %457, %458, %cst_194 {dimension_numbers = #tpu.dot_dimension_numbers<[1], [0], [0], [1], [0, 0, 1, 1], [], []>} : vector<4x32xf32>, vector<32x8xf32>, vector<4x8xf32> -> vector<4x8xf32>
    %461 = vector.broadcast %459 : vector<1x8xf32> to vector<4x8xf32>
    %462 = arith.addf %460, %461 : vector<4x8xf32>
    %463 = vector.extract_strided_slice %462 {offsets = [0, 0], sizes = [4, 4], strides = [1, 1]} : vector<4x8xf32> to vector<4x4xf32>
    %464 = vector.extract_strided_slice %462 {offsets = [0, 4], sizes = [4, 4], strides = [1, 1]} : vector<4x8xf32> to vector<4x4xf32>
    %cst_195 = arith.constant 1.000000e+00 : f32
    %465 = vector.broadcast %cst_195 : f32 to vector<4x4xf32>
    %466 = arith.mulf %464, %465 : vector<4x4xf32>
    %cst_196 = arith.constant 0.000000e+00 : f32
    %467 = vector.broadcast %cst_196 : f32 to vector<4x4xf32>
    %468 = arith.cmpf oge, %466, %467 : vector<4x4xf32>
    %cst_197 = arith.constant 1.000000e+00 : f32
    %cst_198 = arith.constant -1.000000e+00 : f32
    %469 = vector.broadcast %cst_197 : f32 to vector<4x4xf32>
    %470 = vector.broadcast %cst_198 : f32 to vector<4x4xf32>
    %471 = arith.select %468, %469, %470 : vector<4x4xi1>, vector<4x4xf32>
    %472 = math.absf %466 : vector<4x4xf32>
    %cst_199 = arith.constant 2.41421366 : f32
    %473 = vector.broadcast %cst_199 : f32 to vector<4x4xf32>
    %474 = arith.cmpf ogt, %472, %473 : vector<4x4xf32>
    %cst_200 = arith.constant -1.000000e+00 : f32
    %475 = vector.broadcast %cst_200 : f32 to vector<4x4xf32>
    %476 = arith.divf %475, %472 : vector<4x4xf32>
    %cst_201 = arith.constant 0.414213568 : f32
    %477 = vector.broadcast %cst_201 : f32 to vector<4x4xf32>
    %478 = arith.cmpf ogt, %472, %477 : vector<4x4xf32>
    %cst_202 = arith.constant 1.000000e+00 : f32
    %479 = vector.broadcast %cst_202 : f32 to vector<4x4xf32>
    %480 = arith.subf %472, %479 : vector<4x4xf32>
    %cst_203 = arith.constant 1.000000e+00 : f32
    %481 = vector.broadcast %cst_203 : f32 to vector<4x4xf32>
    %482 = arith.addf %472, %481 : vector<4x4xf32>
    %483 = arith.divf %480, %482 : vector<4x4xf32>
    %484 = arith.select %478, %483, %472 : vector<4x4xi1>, vector<4x4xf32>
    %485 = arith.select %474, %476, %484 : vector<4x4xi1>, vector<4x4xf32>
    %cst_204 = arith.constant 2.41421366 : f32
    %486 = vector.broadcast %cst_204 : f32 to vector<4x4xf32>
    %487 = arith.cmpf ogt, %472, %486 : vector<4x4xf32>
    %cst_205 = arith.constant 0.414213568 : f32
    %488 = vector.broadcast %cst_205 : f32 to vector<4x4xf32>
    %489 = arith.cmpf ogt, %472, %488 : vector<4x4xf32>
    %cst_206 = arith.constant 0.785398185 : f32
    %cst_207 = arith.constant 0.000000e+00 : f32
    %490 = vector.broadcast %cst_206 : f32 to vector<4x4xf32>
    %491 = vector.broadcast %cst_207 : f32 to vector<4x4xf32>
    %492 = arith.select %489, %490, %491 : vector<4x4xi1>, vector<4x4xf32>
    %cst_208 = arith.constant 1.57079637 : f32
    %493 = vector.broadcast %cst_208 : f32 to vector<4x4xf32>
    %494 = arith.select %487, %493, %492 : vector<4x4xi1>, vector<4x4xf32>
    %495 = arith.mulf %485, %485 : vector<4x4xf32>
    %cst_209 = arith.constant 0.0805374458 : f32
    %496 = vector.broadcast %cst_209 : f32 to vector<4x4xf32>
    %497 = arith.mulf %496, %495 : vector<4x4xf32>
    %cst_210 = arith.constant 0.138776854 : f32
    %498 = vector.broadcast %cst_210 : f32 to vector<4x4xf32>
    %499 = arith.subf %497, %498 : vector<4x4xf32>
    %500 = arith.mulf %499, %495 : vector<4x4xf32>
    %cst_211 = arith.constant 0.199777111 : f32
    %501 = vector.broadcast %cst_211 : f32 to vector<4x4xf32>
    %502 = arith.addf %500, %501 : vector<4x4xf32>
    %503 = arith.mulf %502, %495 : vector<4x4xf32>
    %cst_212 = arith.constant 0.333329499 : f32
    %504 = vector.broadcast %cst_212 : f32 to vector<4x4xf32>
    %505 = arith.subf %503, %504 : vector<4x4xf32>
    %506 = arith.mulf %505, %495 : vector<4x4xf32>
    %507 = arith.mulf %506, %485 : vector<4x4xf32>
    %508 = arith.addf %494, %507 : vector<4x4xf32>
    %509 = arith.addf %508, %485 : vector<4x4xf32>
    %510 = arith.mulf %471, %509 : vector<4x4xf32>
    %cst_213 = arith.constant 0.636619746 : f32
    %511 = vector.broadcast %cst_213 : f32 to vector<4x4xf32>
    %512 = arith.mulf %511, %510 : vector<4x4xf32>
    %513 = math.exp %512 : vector<4x4xf32>
    %514 = arith.mulf %423, %513 : vector<4x4xf32>
    %515 = arith.addf %514, %463 : vector<4x4xf32>
    %c720 = arith.constant 720 : index
    %c0_214 = arith.constant 0 : index
    %516 = vector.load %arg2[%c720, %c0_214] : memref<912x32xf32, #tpu.memory_space<vmem>>, vector<4x32xf32>
    %cst_215 = arith.constant dense<0.000000e+00> : vector<4x32xf32>
    %517 = tpu.matmul %515, %516, %cst_215 {dimension_numbers = #tpu.dot_dimension_numbers<[1], [0], [0], [1], [0, 0, 1, 1], [], []>} : vector<4x4xf32>, vector<4x32xf32>, vector<4x32xf32> -> vector<4x32xf32>
    %518 = arith.addf %517, %34 : vector<4x32xf32>
    %cst_216 = arith.constant 0.000000e+00 : f32
    %519 = vector.broadcast %cst_216 : f32 to vector<4x32xf32>
    %520 = arith.cmpf ogt, %518, %519 : vector<4x32xf32>
    %521 = math.exp %518 : vector<4x32xf32>
    %cst_217 = arith.constant 1.000000e+00 : f32
    %522 = vector.broadcast %cst_217 : f32 to vector<4x32xf32>
    %523 = arith.subf %521, %522 : vector<4x32xf32>
    %524 = arith.select %520, %518, %523 : vector<4x32xi1>, vector<4x32xf32>
    %c744 = arith.constant 744 : index
    %c0_218 = arith.constant 0 : index
    %525 = vector.load %arg2[%c744, %c0_218] : memref<912x32xf32, #tpu.memory_space<vmem>>, vector<32x32xf32>
    %c776 = arith.constant 776 : index
    %c0_219 = arith.constant 0 : index
    %526 = vector.load %arg2[%c776, %c0_219] : memref<912x32xf32, #tpu.memory_space<vmem>>, vector<1x32xf32>
    %cst_220 = arith.constant dense<0.000000e+00> : vector<4x32xf32>
    %527 = tpu.matmul %524, %525, %cst_220 {dimension_numbers = #tpu.dot_dimension_numbers<[1], [0], [0], [1], [0, 0, 1, 1], [], []>} : vector<4x32xf32>, vector<32x32xf32>, vector<4x32xf32> -> vector<4x32xf32>
    %528 = vector.broadcast %526 : vector<1x32xf32> to vector<4x32xf32>
    %529 = arith.addf %527, %528 : vector<4x32xf32>
    %cst_221 = arith.constant 0.000000e+00 : f32
    %530 = vector.broadcast %cst_221 : f32 to vector<4x32xf32>
    %531 = arith.cmpf ogt, %529, %530 : vector<4x32xf32>
    %532 = math.exp %529 : vector<4x32xf32>
    %cst_222 = arith.constant 1.000000e+00 : f32
    %533 = vector.broadcast %cst_222 : f32 to vector<4x32xf32>
    %534 = arith.subf %532, %533 : vector<4x32xf32>
    %535 = arith.select %531, %529, %534 : vector<4x32xi1>, vector<4x32xf32>
    %536 = arith.addf %524, %535 : vector<4x32xf32>
    %c784 = arith.constant 784 : index
    %c0_223 = arith.constant 0 : index
    %537 = vector.load %arg2[%c784, %c0_223] : memref<912x32xf32, #tpu.memory_space<vmem>>, vector<32x32xf32>
    %c816 = arith.constant 816 : index
    %c0_224 = arith.constant 0 : index
    %538 = vector.load %arg2[%c816, %c0_224] : memref<912x32xf32, #tpu.memory_space<vmem>>, vector<1x32xf32>
    %cst_225 = arith.constant dense<0.000000e+00> : vector<4x32xf32>
    %539 = tpu.matmul %536, %537, %cst_225 {dimension_numbers = #tpu.dot_dimension_numbers<[1], [0], [0], [1], [0, 0, 1, 1], [], []>} : vector<4x32xf32>, vector<32x32xf32>, vector<4x32xf32> -> vector<4x32xf32>
    %540 = vector.broadcast %538 : vector<1x32xf32> to vector<4x32xf32>
    %541 = arith.addf %539, %540 : vector<4x32xf32>
    %cst_226 = arith.constant 0.000000e+00 : f32
    %542 = vector.broadcast %cst_226 : f32 to vector<4x32xf32>
    %543 = arith.cmpf ogt, %541, %542 : vector<4x32xf32>
    %544 = math.exp %541 : vector<4x32xf32>
    %cst_227 = arith.constant 1.000000e+00 : f32
    %545 = vector.broadcast %cst_227 : f32 to vector<4x32xf32>
    %546 = arith.subf %544, %545 : vector<4x32xf32>
    %547 = arith.select %543, %541, %546 : vector<4x32xi1>, vector<4x32xf32>
    %548 = arith.addf %536, %547 : vector<4x32xf32>
    %c824 = arith.constant 824 : index
    %c0_228 = arith.constant 0 : index
    %549 = vector.load %arg2[%c824, %c0_228] : memref<912x32xf32, #tpu.memory_space<vmem>>, vector<32x8xf32>
    %c856 = arith.constant 856 : index
    %c0_229 = arith.constant 0 : index
    %550 = vector.load %arg2[%c856, %c0_229] : memref<912x32xf32, #tpu.memory_space<vmem>>, vector<1x8xf32>
    %cst_230 = arith.constant dense<0.000000e+00> : vector<4x8xf32>
    %551 = tpu.matmul %548, %549, %cst_230 {dimension_numbers = #tpu.dot_dimension_numbers<[1], [0], [0], [1], [0, 0, 1, 1], [], []>} : vector<4x32xf32>, vector<32x8xf32>, vector<4x8xf32> -> vector<4x8xf32>
    %552 = vector.broadcast %550 : vector<1x8xf32> to vector<4x8xf32>
    %553 = arith.addf %551, %552 : vector<4x8xf32>
    %554 = vector.extract_strided_slice %553 {offsets = [0, 0], sizes = [4, 4], strides = [1, 1]} : vector<4x8xf32> to vector<4x4xf32>
    %555 = vector.extract_strided_slice %553 {offsets = [0, 4], sizes = [4, 4], strides = [1, 1]} : vector<4x8xf32> to vector<4x4xf32>
    %cst_231 = arith.constant 1.000000e+00 : f32
    %556 = vector.broadcast %cst_231 : f32 to vector<4x4xf32>
    %557 = arith.mulf %555, %556 : vector<4x4xf32>
    %cst_232 = arith.constant 0.000000e+00 : f32
    %558 = vector.broadcast %cst_232 : f32 to vector<4x4xf32>
    %559 = arith.cmpf oge, %557, %558 : vector<4x4xf32>
    %cst_233 = arith.constant 1.000000e+00 : f32
    %cst_234 = arith.constant -1.000000e+00 : f32
    %560 = vector.broadcast %cst_233 : f32 to vector<4x4xf32>
    %561 = vector.broadcast %cst_234 : f32 to vector<4x4xf32>
    %562 = arith.select %559, %560, %561 : vector<4x4xi1>, vector<4x4xf32>
    %563 = math.absf %557 : vector<4x4xf32>
    %cst_235 = arith.constant 2.41421366 : f32
    %564 = vector.broadcast %cst_235 : f32 to vector<4x4xf32>
    %565 = arith.cmpf ogt, %563, %564 : vector<4x4xf32>
    %cst_236 = arith.constant -1.000000e+00 : f32
    %566 = vector.broadcast %cst_236 : f32 to vector<4x4xf32>
    %567 = arith.divf %566, %563 : vector<4x4xf32>
    %cst_237 = arith.constant 0.414213568 : f32
    %568 = vector.broadcast %cst_237 : f32 to vector<4x4xf32>
    %569 = arith.cmpf ogt, %563, %568 : vector<4x4xf32>
    %cst_238 = arith.constant 1.000000e+00 : f32
    %570 = vector.broadcast %cst_238 : f32 to vector<4x4xf32>
    %571 = arith.subf %563, %570 : vector<4x4xf32>
    %cst_239 = arith.constant 1.000000e+00 : f32
    %572 = vector.broadcast %cst_239 : f32 to vector<4x4xf32>
    %573 = arith.addf %563, %572 : vector<4x4xf32>
    %574 = arith.divf %571, %573 : vector<4x4xf32>
    %575 = arith.select %569, %574, %563 : vector<4x4xi1>, vector<4x4xf32>
    %576 = arith.select %565, %567, %575 : vector<4x4xi1>, vector<4x4xf32>
    %cst_240 = arith.constant 2.41421366 : f32
    %577 = vector.broadcast %cst_240 : f32 to vector<4x4xf32>
    %578 = arith.cmpf ogt, %563, %577 : vector<4x4xf32>
    %cst_241 = arith.constant 0.414213568 : f32
    %579 = vector.broadcast %cst_241 : f32 to vector<4x4xf32>
    %580 = arith.cmpf ogt, %563, %579 : vector<4x4xf32>
    %cst_242 = arith.constant 0.785398185 : f32
    %cst_243 = arith.constant 0.000000e+00 : f32
    %581 = vector.broadcast %cst_242 : f32 to vector<4x4xf32>
    %582 = vector.broadcast %cst_243 : f32 to vector<4x4xf32>
    %583 = arith.select %580, %581, %582 : vector<4x4xi1>, vector<4x4xf32>
    %cst_244 = arith.constant 1.57079637 : f32
    %584 = vector.broadcast %cst_244 : f32 to vector<4x4xf32>
    %585 = arith.select %578, %584, %583 : vector<4x4xi1>, vector<4x4xf32>
    %586 = arith.mulf %576, %576 : vector<4x4xf32>
    %cst_245 = arith.constant 0.0805374458 : f32
    %587 = vector.broadcast %cst_245 : f32 to vector<4x4xf32>
    %588 = arith.mulf %587, %586 : vector<4x4xf32>
    %cst_246 = arith.constant 0.138776854 : f32
    %589 = vector.broadcast %cst_246 : f32 to vector<4x4xf32>
    %590 = arith.subf %588, %589 : vector<4x4xf32>
    %591 = arith.mulf %590, %586 : vector<4x4xf32>
    %cst_247 = arith.constant 0.199777111 : f32
    %592 = vector.broadcast %cst_247 : f32 to vector<4x4xf32>
    %593 = arith.addf %591, %592 : vector<4x4xf32>
    %594 = arith.mulf %593, %586 : vector<4x4xf32>
    %cst_248 = arith.constant 0.333329499 : f32
    %595 = vector.broadcast %cst_248 : f32 to vector<4x4xf32>
    %596 = arith.subf %594, %595 : vector<4x4xf32>
    %597 = arith.mulf %596, %586 : vector<4x4xf32>
    %598 = arith.mulf %597, %576 : vector<4x4xf32>
    %599 = arith.addf %585, %598 : vector<4x4xf32>
    %600 = arith.addf %599, %576 : vector<4x4xf32>
    %601 = arith.mulf %562, %600 : vector<4x4xf32>
    %cst_249 = arith.constant 0.636619746 : f32
    %602 = vector.broadcast %cst_249 : f32 to vector<4x4xf32>
    %603 = arith.mulf %602, %601 : vector<4x4xf32>
    %604 = math.exp %603 : vector<4x4xf32>
    %605 = arith.mulf %424, %604 : vector<4x4xf32>
    %606 = arith.addf %605, %554 : vector<4x4xf32>
    %cst_250 = arith.constant dense<0.000000e+00> : vector<4xf32>
    %607 = vector.multi_reduction <add>, %512, %cst_250 [1] : vector<4x4xf32> to vector<4xf32>
    %608 = vector.shape_cast %607 : vector<4xf32> to vector<4x1xf32>
    %cst_251 = arith.constant dense<0.000000e+00> : vector<4xf32>
    %609 = vector.multi_reduction <add>, %603, %cst_251 [1] : vector<4x4xf32> to vector<4xf32>
    %610 = vector.shape_cast %609 : vector<4xf32> to vector<4x1xf32>
    %611 = arith.addf %608, %610 : vector<4x1xf32>
    %612 = arith.addf %417, %611 : vector<4x1xf32>
    %c896 = arith.constant 896 : index
    %c0_252 = arith.constant 0 : index
    %613 = vector.load %arg2[%c896, %c0_252] : memref<912x32xf32, #tpu.memory_space<vmem>>, vector<4x8xf32>
    %c904 = arith.constant 904 : index
    %c0_253 = arith.constant 0 : index
    %614 = vector.load %arg2[%c904, %c0_253] : memref<912x32xf32, #tpu.memory_space<vmem>>, vector<4x8xf32>
    %cst_254 = arith.constant dense<0.000000e+00> : vector<4x8xf32>
    %615 = tpu.matmul %515, %613, %cst_254 {dimension_numbers = #tpu.dot_dimension_numbers<[1], [0], [0], [1], [0, 0, 1, 1], [], []>} : vector<4x4xf32>, vector<4x8xf32>, vector<4x8xf32> -> vector<4x8xf32>
    %cst_255 = arith.constant dense<0.000000e+00> : vector<4x8xf32>
    %616 = tpu.matmul %606, %614, %cst_255 {dimension_numbers = #tpu.dot_dimension_numbers<[1], [0], [0], [1], [0, 0, 1, 1], [], []>} : vector<4x4xf32>, vector<4x8xf32>, vector<4x8xf32> -> vector<4x8xf32>
    %617 = arith.addf %615, %616 : vector<4x8xf32>
    %c0_256 = arith.constant 0 : index
    %c0_257 = arith.constant 0 : index
    %618 = vector.load %arg3[%c0_256, %c0_257] : memref<4x8xf32, #tpu.memory_space<vmem>>, vector<4x8xf32>
    tpu.vector_store %arg3[%c0_256, %c0_257], %617 {strides = array<i32>} : memref<4x8xf32, #tpu.memory_space<vmem>>, vector<4x8xf32>,
    %c0_258 = arith.constant 0 : index
    %c0_259 = arith.constant 0 : index
    %619 = vector.load %arg4[%c0_258, %c0_259] : memref<4x1xf32, #tpu.memory_space<vmem>>, vector<4x1xf32>
    tpu.vector_store %arg4[%c0_258, %c0_259], %612 {strides = array<i32>} : memref<4x1xf32, #tpu.memory_space<vmem>>, vector<4x1xf32>,
    return
  }
}

</mosaic_0001>

<bundles_post_ra>
// kernel: model_forward.1
= control target key start
LH: loop header
LB: loop body
LE: loop exit
PB: predicated region body
PF: predicated region fallthrough
CT: control target
= control target key end

     0   :  { %s3919_s19 = smov 124   ;;  %v3920_v2 = vmov 0.0   ;;  %vm29_vm0 = vcmask 1043456   ;;  %vm25_vm1 = vcmask 31744   ;;  %vm3921_vm2 = vmmov 0   ;;  %s4612_s0 = inlined_call_operand.vmem [shape: f32[4,8], index: 0, kind: input, shape index: {}]   ;;  %s4613_s1 = inlined_call_operand.vmem [shape: f32[4,4], index: 1, kind: input, shape index: {}]   ;;  %s4614_s2 = inlined_call_operand.vmem [shape: f32[912,32], index: 2, kind: input, shape index: {}]   ;;  %s4615_s3 = inlined_call_operand.hbm [shape: f32[4,8], index: 3, kind: output, shape index: {0}]   ;;  %s4616_s4 = inlined_call_operand.vmem [shape: f32[4,1], index: 4, kind: output, shape index: {1}]  }
   0x1   :  { %v3953_v0 = vld [vmem:[%s4612_s0] sm:$0xf]  ;;  %v19_v1 = vld [vmem:[%s4614_s2 + $0x8] sm:$0xf]  ;;  %3531 = vmatprep.subr.mxu0 %v3920_v2  ;;  %3533 = vmatprep.mubr.msk.f32.mxu0 %vm3921_vm2, %v3920_v2 }
   0x2   :  { %500 = vrot.lane.b32.xlu0 %v3953_v0, %s3919_s19  ;;  %v18_v3 = vld [vmem:[%s4613_s1] sm:$0xf]  ;;  %3532 = vmatpush3.msk.msra.mxu0 %vm29_vm0, %v19_v1  ;;  %v182_v4 = vld [vmem:[%s4614_s2 + $0x128] sm:$0xf] }
   0x3   :  { %3534 = vmatmul.mubr.msk.f32.vlgmr.msra.gmra.mxu0 %vm25_vm1, %v18_v3  ;;  %3541 = vmatprep.subr.mxu0 %v3920_v2 }
   0x4   :  { %10 = vsyncpa [#allocation3], 0  ;;  %3542 = vmatpush3.msk.msra.mxu0 %vm29_vm0, %v182_v4  ;;  %3543 = vmatprep.mubr.msk.f32.mxu0 %vm3921_vm2, %v3920_v2  ;;  %v340_v5 = vld [vmem:[%s4614_s2 + $0x248] sm:$0xf]  ;;  %v498_v6 = vld [vmem:[%s4614_s2] sm:$0xf] }
   0x5   :  { %3551 = vmatprep.subr.mxu0 %v3920_v2  ;;  %3536 = vmatprep.subr.mxu1 %v3920_v2  ;;  %v103_v8 = vld [vmem:[%s4614_s2 + $0x98] sm:$0xf]  ;;  %v585_v11 = vld [vmem:[%s4614_s2 + $0x30] sm:$0xff]  ;;  %v584_v13 = vld [vmem:[%s4614_s2 + $0x28] sm:$0xff]  ;;  %vm591_vm3 = vcmask 261120   ;;  %s3923_s21 = smov 4  }
   0x6   :  { %3538 = vmatprep.mubr.msk.f32.mxu1 %vm3921_vm2, %v3920_v2  ;;  %3537 = vmatpush3.msk.msra.mxu1 %vm29_vm0, %v103_v8  ;;  %v261_v9 = vld [vmem:[%s4614_s2 + $0x1b8] sm:$0xf]  ;;  %v583_v15 = vld [vmem:[%s4614_s2 + $0x20] sm:$0xff]  ;;  %v3291_v21 = vld [vmem:[%s4614_s2 + $0x10] ss:$0 sm:$0xff]  ;;  %s3924_s9 = smov [#allocation2]  }
   0x7   :  { %3544 = vmatmul.mubr.msk.f32.vlgmr.msra.gmra.mxu0 %vm25_vm1, %v18_v3  ;;  %3539 = vmatmul.mubr.msk.f32.vlgmr.msra.gmra.mxu1 %vm25_vm1, %v18_v3  ;;  %v419_v10 = vld [vmem:[%s4614_s2 + $0x2d8] sm:$0xf]  ;;  %v673_v37 = vld [vmem:[%s4614_s2 + $0x50] sm:$0xff]  ;;  %v672_v38 = vld [vmem:[%s4614_s2 + $0x48] sm:$0xff]  ;;  %s3279_s10 = sshll.u32 %s3924_s9, 4  ;;  %s3280_s10 = int_to_ptr.vmem [resolvable:$true] %s3279_s10 }
   0x8   :  { %3552 = vmatpush3.msk.msra.mxu0 %vm29_vm0, %v340_v5  ;;  %3553 = vmatprep.mubr.msk.f32.mxu0 %vm3921_vm2, %v3920_v2  ;;  %v582_v17 = vld [vmem:[%s4614_s2 + $0x18] sm:$0xff]  ;;  %v671_v39 = vld [vmem:[%s4614_s2 + $0x40] sm:$0xff]  ;;  %v760_v51 = vld [vmem:[%s4614_s2 + $0x70] sm:$0xff]  ;;  %s3897_s11 = scalar_lea.vmem %s3280_s10, 64  ;;  %p3902_p1 = scmp.lt.s32.totalorder %s3280_s10, %s3280_s10 }
   0x9   :  { %3561 = vmatprep.subr.mxu0 %v3920_v2  ;;  %3546 = vmatprep.subr.mxu1 %v3920_v2  ;;  %v674_v36 = vld [vmem:[%s4614_s2 + $0x58] sm:$0xff]  ;;  %v762_v49 = vld [vmem:[%s4614_s2 + $0x80] sm:$0xff]  ;;  %v759_v52 = vld [vmem:[%s4614_s2 + $0x68] sm:$0xff]  ;;  %p3898_p0 = scmp.ne.s32.totalorder %s3280_s10, %s3897_s11  ;;  %p3903_p2 = scmp.lt.s32.totalorder %s3897_s11, %s3897_s11 }
   0xa   :  { %3548 = vmatprep.mubr.msk.f32.mxu1 %vm3921_vm2, %v3920_v2  ;;  %3547 = vmatpush3.msk.msra.mxu1 %vm29_vm0, %v261_v9  ;;  %v3312_v40 = vld [vmem:[%s4614_s2 + $0x38] ss:$0 sm:$0xff]  ;;  %v3315_v53 = vld [vmem:[%s4614_s2 + $0x60] ss:$0 sm:$0xff]  ;;  %v3318_v62 = vld [vmem:[%s4614_s2 + $0x88] ss:$0 sm:$0xff] }
   0xb   :  { %3554 = vmatmul.mubr.msk.f32.vlgmr.msra.gmra.mxu0 %vm25_vm1, %v18_v3  ;;  %3549 = vmatmul.mubr.msk.f32.vlgmr.msra.gmra.mxu1 %vm25_vm1, %v18_v3  ;;  %v761_v50 = vld [vmem:[%s4614_s2 + $0x78] sm:$0xff]  ;;  %p3904_p3 = por %p3903_p2, %p3902_p1 }
   0xc   :  { %3562 = vmatpush3.msk.msra.mxu0 %vm29_vm0, %v498_v6  ;;  %3563 = vmatprep.mubr.msk.f32.mxu0 %vm3921_vm2, %v3920_v2 }
   0xd   :  { %3577 = vmatprep.subr.mxu0 %v3920_v2  ;;  %3556 = vmatprep.subr.mxu1 %v3920_v2  ;;  %p3905_p4 = pnand %p3904_p3, %p3898_p0 }
   0xe   :  { %3558 = vmatprep.mubr.msk.f32.mxu1 %vm3921_vm2, %v3920_v2  ;;  %3557 = vmatpush3.msk.msra.mxu1 %vm29_vm0, %v419_v10 }
   0xf   :  { %3559 = vmatmul.mubr.msk.f32.vlgmr.msra.gmra.mxu1 %vm25_vm1, %v18_v3  ;;  %3566 = vmatprep.subr.mxu1 %v3920_v2 }
  0x10   :  { %3574 = vmatprep.mubr.msk.f32.mxu1 %vm3921_vm2, %v3920_v2  ;;  %3567 = vmatpush3.msra.mxu1 %v585_v11 }
  0x11   :  { %3568 = vmatprep.subr.mxu1 %v3920_v2 }
  0x12   :  { %3569 = vmatpush3.msra.mxu1 %v584_v13 }
  0x13   :  { %3570 = vmatprep.subr.mxu1 %v3920_v2 }
  0x14   :  { %3571 = vmatpush3.msra.mxu1 %v583_v15 }
  0x15   :  { %3572 = vmatprep.subr.mxu1 %v3920_v2 }
  0x16   :  { %3573 = vmatpush3.msra.mxu1 %v582_v17 }
  0x17   :  { %3588 = vmatprep.subr.mxu1 %v3920_v2 }
  0x74   :  { %v501_v7 = vpop.permute.xlu0 %500 }
  0x75   :  { %3564 = vmatmul.mubr.msk.f32.vlgmr.msra.gmra.mxu0 %vm25_vm1, %v501_v7 }
  0x76   :  { %3585 = vmatprep.mubr.msk.f32.mxu0 %vm3921_vm2, %v3920_v2  ;;  %3578 = vmatpush3.msra.mxu0 %v674_v36  ;;  %v877_v36 = vld [vmem:[%s4614_s2 + $0x90] sm:$0xf] }
  0x77   :  { %3579 = vmatprep.subr.mxu0 %v3920_v2 }
  0x78   :  { %3580 = vmatpush3.msra.mxu0 %v673_v37 }
  0x79   :  { %3581 = vmatprep.subr.mxu0 %v3920_v2 }
  0x7a   :  { %3582 = vmatpush3.msra.mxu0 %v672_v38 }
  0x7b   :  { %3583 = vmatprep.subr.mxu0 %v3920_v2 }
  0x7c   :  { %3584 = vmatpush3.msra.mxu0 %v671_v39 }
  0x7d   :  { %3599 = vmatprep.subr.mxu0 %v3920_v2 }
  0xc3   :  { %v99_v12 = vpop.f32.mrf.mxu0 }
  0xc4   :  { %v100_v22 = vadd.f32 %v3291_v21, %v99_v12 }
  0xc5   :  { %v3535_v14 = vpop.f32.mrf.mxu0 }
  0xc7   :  { %v4033_v16 = vpop.f32.mrf.mxu0  ;;  %v4048_v30 = vpop.f32.mrf.mxu1 }
  0xc9   :  { %v3545_v18 = vpop.f32.mrf.mxu0  ;;  %v3540_v31 = vpop.f32.mrf.mxu1 }
  0xcb   :  { %v4040_v19 = vpop.f32.mrf.mxu0  ;;  %v4050_v32 = vpop.f32.mrf.mxu1 }
  0xcd   :  { %v3555_v20 = vpop.f32.mrf.mxu0  ;;  %v3550_v33 = vpop.f32.mrf.mxu1 }
  0xcf   :  { %v4052_v34 = vpop.f32.mrf.mxu1 }
  0xd1   :  { %v3560_v35 = vpop.f32.mrf.mxu1 }
 0x135   :  { %v573_v23 = vpop.f32.mrf.mxu0 }
 0x136   :  { %v574_v24 = vadd.f32 %v573_v23, %v100_v22 }
 0x137   :  { %v3565_v25 = vpop.f32.mrf.mxu0 }
 0x138   :  { %v578_v26 = vmul.f32 1.442695, %v574_v24  ;;  %vm577_vm4 = vcmp.gt.f32.partialorder %v574_v24, 0.0 }
 0x13a   :  { %3825 = vpow2.f32 %v578_v26 }
 0x147   :  { %v3826_v27 = vpop.eup %3825 }
 0x148   :  { %v3311_v28 = vadd.f32 -1.0, %v3826_v27 }
 0x14a   :  { %v581_v29 = vsel %vm577_vm4, %v574_v24, %v3311_v28  ;;  %v3922_v28 = vmov -1.0  }
 0x14b   :  { %3575 = vmatmul.mubr.msk.f32.vlgmr.msra.gmra.mxu1 %vm591_vm3, %v581_v29 }
 0x14c   :  { %3596 = vmatprep.mubr.msk.f32.mxu1 %vm3921_vm2, %v3920_v2  ;;  %3589 = vmatpush3.msra.mxu1 %v762_v49 }
 0x14d   :  { %3590 = vmatprep.subr.mxu1 %v3920_v2 }
 0x14e   :  { %3591 = vmatpush3.msra.mxu1 %v761_v50 }
 0x14f   :  { %3592 = vmatprep.subr.mxu1 %v3920_v2 }
 0x150   :  { %3593 = vmatpush3.msra.mxu1 %v760_v51 }
 0x151   :  { %3594 = vmatprep.subr.mxu1 %v3920_v2 }
 0x152   :  { %3595 = vmatpush3.msra.mxu1 %v759_v52 }
 0x153   :  { %3615 = vmatprep.subr.mxu1 %v3920_v2 }
 0x20b   :  { %v661_v41 = vpop.f32.mrf.mxu1 }
 0x20c   :  { %v662_v42 = vadd.f32 %v3312_v40, %v661_v41  ;;  %v962_v41 = vld [vmem:[%s4614_s2 + $0xc0] sm:$0xff] }
 0x20d   :  { %v3576_v43 = vpop.f32.mrf.mxu1 }
 0x20e   :  { %v666_v44 = vmul.f32 1.442695, %v662_v42  ;;  %vm665_vm5 = vcmp.gt.f32.partialorder %v662_v42, 0.0  ;;  %v960_v43 = vld [vmem:[%s4614_s2 + $0xb0] sm:$0xff] }
 0x210   :  { %3827 = vpow2.f32 %v666_v44  ;;  %v959_v44 = vld [vmem:[%s4614_s2 + $0xa8] sm:$0xff] }
 0x21d   :  { %v3828_v45 = vpop.eup %3827 }
 0x21e   :  { %v3314_v46 = vadd.f32 -1.0, %v3828_v45  ;;  %v3294_v45 = vld [vmem:[%s4614_s2 + $0xa0] ss:$0 sm:$0xff] }
 0x220   :  { %v669_v47 = vsel %vm665_vm5, %v662_v42, %v3314_v46  ;;  %v961_v42 = vld [vmem:[%s4614_s2 + $0xb8] sm:$0xff]  ;;  %v179_v46 = vadd.f32 %v3294_v45, %v4048_v30  ;;  %v1049_v30 = vld [vmem:[%s4614_s2 + $0xe0] sm:$0xff] }
 0x221   :  { %v670_v48 = vadd.f32 %v669_v47, %v581_v29 }
 0x223   :  { %3586 = vmatmul.mubr.msk.f32.vlgmr.msra.gmra.mxu0 %vm591_vm3, %v670_v48 }
 0x224   :  { %3601 = vmatprep.mubr.msk.f32.mxu0 %vm3921_vm2, %v3920_v2  ;;  %3600 = vmatpush3.msk.msra.mxu0 %vm29_vm0, %v877_v36 }
 0x225   :  { %3604 = vmatprep.subr.mxu0 %v3920_v2 }
 0x2e3   :  { %v749_v54 = vpop.f32.mrf.mxu0 }
 0x2e4   :  { %v750_v55 = vadd.f32 %v3315_v53, %v749_v54  ;;  %v1050_v54 = vld [vmem:[%s4614_s2 + $0xe8] sm:$0xff] }
 0x2e5   :  { %v3587_v56 = vpop.f32.mrf.mxu0 }
 0x2e6   :  { %v754_v57 = vmul.f32 1.442695, %v750_v55  ;;  %vm753_vm6 = vcmp.gt.f32.partialorder %v750_v55, 0.0  ;;  %v1047_v56 = vld [vmem:[%s4614_s2 + $0xd0] sm:$0xff] }
 0x2e8   :  { %3829 = vpow2.f32 %v754_v57  ;;  %v3326_v57 = vld [vmem:[%s4614_s2 + $0xc8] ss:$0 sm:$0xff] }
 0x2f5   :  { %v3830_v58 = vpop.eup %3829 }
 0x2f6   :  { %v3317_v59 = vadd.f32 -1.0, %v3830_v58 }
 0x2f8   :  { %v757_v60 = vsel %vm753_vm6, %v750_v55, %v3317_v59  ;;  %v1048_v55 = vld [vmem:[%s4614_s2 + $0xd8] sm:$0xff] }
 0x2f9   :  { %v758_v61 = vadd.f32 %v757_v60, %v670_v48 }
 0x2fb   :  { %3597 = vmatmul.mubr.msk.f32.vlgmr.msra.gmra.mxu1 %vm591_vm3, %v758_v61 }
 0x2fc   :  { %3623 = vmatprep.mubr.msk.f32.mxu1 %vm3921_vm2, %v3920_v2  ;;  %3616 = vmatpush3.msra.mxu1 %v1050_v54 }
 0x2fd   :  { %3617 = vmatprep.subr.mxu1 %v3920_v2 }
 0x2fe   :  { %3618 = vmatpush3.msra.mxu1 %v1049_v30 }
 0x2ff   :  { %3619 = vmatprep.subr.mxu1 %v3920_v2 }
 0x300   :  { %3620 = vmatpush3.msra.mxu1 %v1048_v55 }
 0x301   :  { %3621 = vmatprep.subr.mxu1 %v3920_v2 }
 0x302   :  { %3622 = vmatpush3.msra.mxu1 %v1047_v56 }
 0x303   :  { %3637 = vmatprep.subr.mxu1 %v3920_v2 }
 0x3bb   :  { %v837_v63 = vpop.f32.mrf.mxu1 }
 0x3bc   :  { %v838_v1 = vadd.f32 %v3318_v62, %v837_v63 }
 0x3bd   :  { %v3598_v3 = vpop.f32.mrf.mxu1 }
 0x3be   :  { %v843_v4 = vand.u32 2147483647, %v838_v1  ;;  %vm841_vm9 = vcmp.ge.f32.partialorder %v838_v1, 0.0 }
 0x3bf   :  { %v842_v29 = vsel %vm841_vm9, 1.0, %v3922_v28 }
 0x3c0   :  { %v849_v5 = vadd.f32 1.0, %v843_v4  ;;  %3831 = vrcp.f32 %v843_v4  ;;  %v3320_v7 = vadd.f32 -1.0, %v843_v4  ;;  %vm847_vm7 = vcmp.gt.f32.partialorder %v843_v4, 0.41421357 }
 0x3c1   :  { %vm844_vm8 = vcmp.gt.f32.partialorder %v843_v4, 2.4142137  ;;  %v854_v22 = vsel %vm847_vm7, 0.7853982, %v3920_v2 }
 0x3c2   :  { %3833 = vrcp.f32 %v849_v5  ;;  %v855_v25 = vsel %vm844_vm8, 1.5707964, %v854_v22  ;;  %v1137_v5 = vld [vmem:[%s4614_s2 + $0x108] sm:$0xff] }
 0x3cd   :  { %v3832_v6 = vpop.eup %3831 }
 0x3ce   :  { %v846_v10 = vmul.f32 -1.0, %v3832_v6  ;;  %v1136_v6 = vld [vmem:[%s4614_s2 + $0x100] sm:$0xff] }
 0x3cf   :  { %v3834_v8 = vpop.eup %3833 }
 0x3d0   :  { %v851_v9 = vmul.f32 %v3834_v8, %v3320_v7  ;;  %v1135_v7 = vld [vmem:[%s4614_s2 + $0xf8] sm:$0xff]  ;;  %v3329_v8 = vld [vmem:[%s4614_s2 + $0xf0] ss:$0 sm:$0xff] }
 0x3d2   :  { %v852_v11 = vsel %vm847_vm7, %v851_v9, %v843_v4  ;;  %v1138_v4 = vld [vmem:[%s4614_s2 + $0x110] sm:$0xff] }
 0x3d3   :  { %v853_v12 = vsel %vm844_vm8, %v846_v10, %v852_v11 }
 0x3d4   :  { %v856_v13 = vmul.f32 %v853_v12, %v853_v12 }
 0x3d6   :  { %v857_v14 = vmul.f32 0.080537446, %v856_v13 }
 0x3d8   :  { %v3321_v15 = vadd.f32 -0.13877685, %v857_v14 }
 0x3da   :  { %v859_v17 = vmul.f32 %v3321_v15, %v856_v13 }
 0x3dc   :  { %v860_v18 = vadd.f32 0.19977711, %v859_v17 }
 0x3de   :  { %v861_v20 = vmul.f32 %v860_v18, %v856_v13  ;;  %v1271_v18 = vld [vmem:[%s4614_s2 + $0x368] sm:$0xf] }
 0x3e0   :  { %v3322_v21 = vadd.f32 -0.3333295, %v861_v20  ;;  %v3332_v20 = vld [vmem:[%s4614_s2 + $0x118] ss:$0 sm:$0xff] }
 0x3e2   :  { %v863_v23 = vmul.f32 %v3322_v21, %v856_v13 }
 0x3e4   :  { %v864_v24 = vmul.f32 %v863_v23, %v853_v12 }
 0x3e6   :  { %v865_v26 = vadd.f32 %v864_v24, %v855_v25 }
 0x3e8   :  { %v866_v27 = vadd.f32 %v865_v26, %v853_v12 }
 0x3ea   :  { %v867_v31 = vmul.f32 %v866_v27, %v842_v29 }
 0x3ec   :  { %v4103_v33 = vmul.f32 0.63661975, %v867_v31 }
 0x3ee   :  { %v869_v35 = vmul.f32 1.442695, %v4103_v33 }
 0x3f0   :  { %3835 = vpow2.f32 %v869_v35 }
 0x3fd   :  { %v3836_v37 = vpop.eup %3835 }
 0x3fe   :  { %872 = vrot.lane.b32.xlu0 %v3836_v37, %s3919_s19 }
 0x470   :  { %v873_v38 = vpop.permute.xlu0 %872 }
 0x471   :  { %v875_v39 = vmul.f32 %v873_v38, %v3953_v0 }
 0x473   :  { %v4113_v40 = vadd.f32 %v875_v39, %v838_v1 }
 0x475   :  { %3602 = vmatmul.mubr.msk.f32.vlgmr.msra.gmra.mxu0 %vm25_vm1, %v4113_v40 }
 0x476   :  { %3612 = vmatprep.mubr.msk.f32.mxu0 %vm3921_vm2, %v3920_v2  ;;  %3605 = vmatpush3.msra.mxu0 %v962_v41 }
 0x477   :  { %3606 = vmatprep.subr.mxu0 %v3920_v2 }
 0x478   :  { %3607 = vmatpush3.msra.mxu0 %v961_v42 }
 0x479   :  { %3608 = vmatprep.subr.mxu0 %v3920_v2 }
 0x47a   :  { %3609 = vmatpush3.msra.mxu0 %v960_v43 }
 0x47b   :  { %3610 = vmatprep.subr.mxu0 %v3920_v2 }
 0x47c   :  { %3611 = vmatpush3.msra.mxu0 %v959_v44 }
 0x47d   :  { %3626 = vmatprep.subr.mxu0 %v3920_v2 }
 0x535   :  { %v950_v47 = vpop.f32.mrf.mxu0 }
 0x536   :  { %v951_v48 = vadd.f32 %v950_v47, %v179_v46 }
 0x537   :  { %v3603_v49 = vpop.f32.mrf.mxu0 }
 0x538   :  { %v955_v50 = vmul.f32 1.442695, %v951_v48  ;;  %vm954_vm10 = vcmp.gt.f32.partialorder %v951_v48, 0.0 }
 0x53a   :  { %3837 = vpow2.f32 %v955_v50 }
 0x547   :  { %v3838_v51 = vpop.eup %3837 }
 0x548   :  { %v3325_v52 = vadd.f32 -1.0, %v3838_v51 }
 0x54a   :  { %v958_v53 = vsel %vm954_vm10, %v951_v48, %v3325_v52 }
 0x54b   :  { %3613 = vmatmul.mubr.msk.f32.vlgmr.msra.gmra.mxu0 %vm591_vm3, %v958_v53 }
 0x54c   :  { %3634 = vmatprep.mubr.msk.f32.mxu0 %vm3921_vm2, %v3920_v2  ;;  %3627 = vmatpush3.msra.mxu0 %v1138_v4  ;;  %v1510_v4 = vld [vmem:[%s4614_s2 + $0x150] sm:$0xff] }
 0x54d   :  { %3628 = vmatprep.subr.mxu0 %v3920_v2 }
 0x54e   :  { %3629 = vmatpush3.msra.mxu0 %v1137_v5  ;;  %v1509_v5 = vld [vmem:[%s4614_s2 + $0x148] sm:$0xff] }
 0x54f   :  { %3630 = vmatprep.subr.mxu0 %v3920_v2 }
 0x550   :  { %3631 = vmatpush3.msra.mxu0 %v1136_v6  ;;  %v1508_v6 = vld [vmem:[%s4614_s2 + $0x140] sm:$0xff] }
 0x551   :  { %3632 = vmatprep.subr.mxu0 %v3920_v2 }
 0x552   :  { %3633 = vmatpush3.msra.mxu0 %v1135_v7  ;;  %v1507_v7 = vld [vmem:[%s4614_s2 + $0x138] sm:$0xff] }
 0x553   :  { %3647 = vmatprep.subr.mxu0 %v3920_v2 }
 0x60b   :  { %v1037_v58 = vpop.f32.mrf.mxu0 }
 0x60c   :  { %v1038_v59 = vadd.f32 %v3326_v57, %v1037_v58 }
 0x60d   :  { %v3614_v60 = vpop.f32.mrf.mxu0 }
 0x60e   :  { %v1042_v61 = vmul.f32 1.442695, %v1038_v59  ;;  %vm1041_vm11 = vcmp.gt.f32.partialorder %v1038_v59, 0.0 }
 0x610   :  { %3839 = vpow2.f32 %v1042_v61 }
 0x61d   :  { %v3840_v62 = vpop.eup %3839 }
 0x61e   :  { %v3328_v63 = vadd.f32 -1.0, %v3840_v62 }
 0x620   :  { %v1045_v1 = vsel %vm1041_vm11, %v1038_v59, %v3328_v63  ;;  %v1270_v59 = vld [vmem:[%s4614_s2 + $0x360] sm:$0xf] }
 0x621   :  { %v1046_v3 = vadd.f32 %v1045_v1, %v958_v53 }
 0x623   :  { %3624 = vmatmul.mubr.msk.f32.vlgmr.msra.gmra.mxu1 %vm591_vm3, %v1046_v3 }
 0x624   :  { %3639 = vmatprep.mubr.msk.f32.mxu1 %vm3921_vm2, %v3920_v2  ;;  %3638 = vmatpush3.msk.msra.mxu1 %vm29_vm0, %v1271_v18  ;;  %v1598_v18 = vld [vmem:[%s4614_s2 + $0x178] sm:$0xff] }
 0x625   :  { %3642 = vmatprep.subr.mxu1 %v3920_v2 }
 0x6e3   :  { %v1125_v9 = vpop.f32.mrf.mxu1 }
 0x6e4   :  { %v1126_v10 = vadd.f32 %v3329_v8, %v1125_v9  ;;  %v3297_v8 = vld [vmem:[%s4614_s2 + $0x130] ss:$0 sm:$0xff] }
 0x6e5   :  { %v3625_v11 = vpop.f32.mrf.mxu1  ;;  %v258_v9 = vadd.f32 %v3297_v8, %v4033_v16  ;;  %v1597_v16 = vld [vmem:[%s4614_s2 + $0x170] sm:$0xff] }
 0x6e6   :  { %v1130_v12 = vmul.f32 1.442695, %v1126_v10  ;;  %vm1129_vm12 = vcmp.gt.f32.partialorder %v1126_v10, 0.0 }
 0x6e8   :  { %3841 = vpow2.f32 %v1130_v12 }
 0x6f5   :  { %v3842_v13 = vpop.eup %3841 }
 0x6f6   :  { %v3331_v14 = vadd.f32 -1.0, %v3842_v13 }
 0x6f8   :  { %v1133_v15 = vsel %vm1129_vm12, %v1126_v10, %v3331_v14 }
 0x6f9   :  { %v1134_v17 = vadd.f32 %v1133_v15, %v1046_v3 }
 0x6fb   :  { %3635 = vmatmul.mubr.msk.f32.vlgmr.msra.gmra.mxu0 %vm591_vm3, %v1134_v17 }
 0x6fc   :  { %3649 = vmatprep.mubr.msk.f32.mxu0 %vm3921_vm2, %v3920_v2 }
 0x7bb   :  { %v1213_v21 = vpop.f32.mrf.mxu0 }
 0x7bc   :  { %v1214_v22 = vadd.f32 %v3332_v20, %v1213_v21  ;;  %v1596_v20 = vld [vmem:[%s4614_s2 + $0x168] sm:$0xff]  ;;  %v1595_v21 = vld [vmem:[%s4614_s2 + $0x160] sm:$0xff] }
 0x7bd   :  { %v3636_v23 = vpop.f32.mrf.mxu0 }
 0x7be   :  { %1249 = vrot.lane.b32.xlu1 %v1214_v22, %s3923_s21  ;;  %v1219_v24 = vand.u32 2147483647, %v1214_v22  ;;  %vm1217_vm15 = vcmp.ge.f32.partialorder %v1214_v22, 0.0  ;;  %v3344_v22 = vld [vmem:[%s4614_s2 + $0x158] ss:$0 sm:$0xff] }
 0x7bf   :  { %v1218_v52 = vsel %vm1217_vm15, 1.0, %v3922_v28 }
 0x7c0   :  { %v1225_v25 = vadd.f32 1.0, %v1219_v24  ;;  %v3334_v27 = vadd.f32 -1.0, %v1219_v24  ;;  %vm1223_vm13 = vcmp.gt.f32.partialorder %v1219_v24, 0.41421357  ;;  %vm1220_vm14 = vcmp.gt.f32.partialorder %v1219_v24, 2.4142137 }
 0x7c1   :  { %v1230_v47 = vsel %vm1223_vm13, 0.7853982, %v3920_v2 }
 0x7c2   :  { %3843 = vrcp.f32 %v1225_v25  ;;  %v1231_v49 = vsel %vm1220_vm14, 1.5707964, %v1230_v47 }
 0x7c3   :  { %3845 = vrcp.f32 %v1219_v24 }
 0x7cf   :  { %v3844_v26 = vpop.eup %3843 }
 0x7d0   :  { %v1227_v29 = vmul.f32 %v3844_v26, %v3334_v27  ;;  %v3846_v31 = vpop.eup %3845 }
 0x7d1   :  { %v1222_v36 = vmul.f32 -1.0, %v3846_v31 }
 0x7d2   :  { %v1228_v35 = vsel %vm1223_vm13, %v1227_v29, %v1219_v24 }
 0x7d3   :  { %v1229_v37 = vsel %vm1220_vm14, %v1222_v36, %v1228_v35  ;;  %v1686_v36 = vld [vmem:[%s4614_s2 + $0x1a0] sm:$0xff] }
 0x7d4   :  { %v1232_v38 = vmul.f32 %v1229_v37, %v1229_v37 }
 0x7d6   :  { %v1233_v39 = vmul.f32 0.080537446, %v1232_v38 }
 0x7d8   :  { %v3335_v41 = vadd.f32 -0.13877685, %v1233_v39  ;;  %v1683_v39 = vld [vmem:[%s4614_s2 + $0x188] sm:$0xff] }
 0x7da   :  { %v1235_v42 = vmul.f32 %v3335_v41, %v1232_v38  ;;  %v3347_v41 = vld [vmem:[%s4614_s2 + $0x180] ss:$0 sm:$0xff] }
 0x7dc   :  { %v1236_v43 = vadd.f32 0.19977711, %v1235_v42 }
 0x7de   :  { %v1237_v44 = vmul.f32 %v1236_v43, %v1232_v38 }
 0x7e0   :  { %v3336_v45 = vadd.f32 -0.3333295, %v1237_v44 }
 0x7e2   :  { %v1239_v46 = vmul.f32 %v3336_v45, %v1232_v38  ;;  %v1684_v38 = vld [vmem:[%s4614_s2 + $0x190] sm:$0xff] }
 0x7e4   :  { %v1240_v48 = vmul.f32 %v1239_v46, %v1229_v37 }
 0x7e6   :  { %v1241_v50 = vadd.f32 %v1240_v48, %v1231_v49 }
 0x7e8   :  { %v1242_v51 = vadd.f32 %v1241_v50, %v1229_v37  ;;  %v1685_v37 = vld [vmem:[%s4614_s2 + $0x198] sm:$0xff]  ;;  %v3350_v50 = vld [vmem:[%s4614_s2 + $0x1a8] ss:$0 sm:$0xff] }
 0x7ea   :  { %v1243_v53 = vmul.f32 %v1242_v51, %v1218_v52 }
 0x7ec   :  { %v4197_v54 = vmul.f32 0.63661975, %v1243_v53 }
 0x7ee   :  { %v1245_v30 = vmul.f32 1.442695, %v4197_v54 }
 0x7f0   :  { %3847 = vpow2.f32 %v1245_v30 }
 0x7fd   :  { %v3848_v55 = vpop.eup %3847 }
 0x7fe   :  { %v1247_v56 = vmul.f32 %v3848_v55, %v3953_v0  ;;  %v1423_v0 = vld [vmem:[%s4614_s2 + $0x120] sm:$0xf] }
 0x7ff   :  { %3648 = vmatpush3.msk.msra.mxu0 %vm29_vm0, %v1423_v0 }
 0x800   :  { %3663 = vmatprep.subr.mxu0 %v3920_v2 }
 0x830   :  { %v1250_v57 = vpop.permute.xlu1 %1249 }
 0x831   :  { %v1252_v58 = vadd.f32 %v1250_v57, %v1247_v56 }
 0x833   :  { %1273 = vrot.lane.b32.xlu1 %v1252_v58, %s3919_s19 }
 0x8a5   :  { %v1274_v60 = vpop.permute.xlu1 %1273 }
 0x8a6   :  { %3640 = vmatmul.mubr.msk.f32.vlgmr.msra.gmra.mxu1 %vm25_vm1, %v1274_v60 }
 0x8a7   :  { %3643 = vmatpush3.msk.msra.mxu1 %vm29_vm0, %v1270_v59  ;;  %3644 = vmatprep.mubr.msk.f32.mxu1 %vm3921_vm2, %v3920_v2 }
 0x8a8   :  { %3652 = vmatprep.subr.mxu1 %v3920_v2 }
 0x8aa   :  { %3645 = vmatmul.mubr.msk.f32.vlgmr.msra.gmra.mxu1 %vm25_vm1, %v4113_v40 }
 0x8ab   :  { %3660 = vmatprep.mubr.msk.f32.mxu1 %vm3921_vm2, %v3920_v2  ;;  %3653 = vmatpush3.msra.mxu1 %v1510_v4 }
 0x8ac   :  { %3654 = vmatprep.subr.mxu1 %v3920_v2 }
 0x8ad   :  { %3655 = vmatpush3.msra.mxu1 %v1509_v5 }
 0x8ae   :  { %3656 = vmatprep.subr.mxu1 %v3920_v2 }
 0x8af   :  { %3657 = vmatpush3.msra.mxu1 %v1508_v6 }
 0x8b0   :  { %3658 = vmatprep.subr.mxu1 %v3920_v2 }
 0x8b1   :  { %3659 = vmatpush3.msra.mxu1 %v1507_v7 }
 0x8b2   :  { %3674 = vmatprep.subr.mxu1 %v3920_v2 }
 0x966   :  { %v1346_v61 = vpop.f32.mrf.mxu1 }
 0x968   :  { %v3641_v62 = vpop.f32.mrf.mxu1 }
 0x96a   :  { %v1419_v63 = vpop.f32.mrf.mxu1 }
 0x96b   :  { %v4219_v1 = vadd.f32 %v1419_v63, %v1346_v61 }
 0x96c   :  { %v3646_v3 = vpop.f32.mrf.mxu1 }
 0x96d   :  { %1425 = vrot.lane.b32.xlu0 %v4219_v1, %s3919_s19 }
 0x9df   :  { %v1426_v40 = vpop.permute.xlu0 %1425 }
 0x9e0   :  { %3650 = vmatmul.mubr.msk.f32.vlgmr.msra.gmra.mxu0 %vm25_vm1, %v1426_v40 }
 0x9e1   :  { %3671 = vmatprep.mubr.msk.f32.mxu0 %vm3921_vm2, %v3920_v2  ;;  %3664 = vmatpush3.msra.mxu0 %v1598_v18  ;;  %v1801_v18 = vld [vmem:[%s4614_s2 + $0x1b0] sm:$0xf] }
 0x9e2   :  { %3665 = vmatprep.subr.mxu0 %v3920_v2 }
 0x9e3   :  { %3666 = vmatpush3.msra.mxu0 %v1597_v16 }
 0x9e4   :  { %3667 = vmatprep.subr.mxu0 %v3920_v2 }
 0x9e5   :  { %3668 = vmatpush3.msra.mxu0 %v1596_v20 }
 0x9e6   :  { %3669 = vmatprep.subr.mxu0 %v3920_v2 }
 0x9e7   :  { %3670 = vmatpush3.msra.mxu0 %v1595_v21 }
 0x9e8   :  { %3685 = vmatprep.subr.mxu0 %v3920_v2 }
 0xaa0   :  { %v1498_v10 = vpop.f32.mrf.mxu0 }
 0xaa1   :  { %v1499_v11 = vadd.f32 %v1498_v10, %v258_v9 }
 0xaa2   :  { %v3651_v12 = vpop.f32.mrf.mxu0 }
 0xaa3   :  { %v1503_v13 = vmul.f32 1.442695, %v1499_v11  ;;  %vm1502_vm4 = vcmp.gt.f32.partialorder %v1499_v11, 0.0 }
 0xaa5   :  { %3849 = vpow2.f32 %v1503_v13 }
 0xab2   :  { %v3850_v14 = vpop.eup %3849 }
 0xab3   :  { %v3343_v15 = vadd.f32 -1.0, %v3850_v14 }
 0xab5   :  { %v1506_v17 = vsel %vm1502_vm4, %v1499_v11, %v3343_v15 }
 0xab6   :  { %3661 = vmatmul.mubr.msk.f32.vlgmr.msra.gmra.mxu1 %vm591_vm3, %v1506_v17 }
 0xab7   :  { %3682 = vmatprep.mubr.msk.f32.mxu1 %vm3921_vm2, %v3920_v2  ;;  %3675 = vmatpush3.msra.mxu1 %v1686_v36 }
 0xab8   :  { %3676 = vmatprep.subr.mxu1 %v3920_v2 }
 0xab9   :  { %3677 = vmatpush3.msra.mxu1 %v1685_v37 }
 0xaba   :  { %3678 = vmatprep.subr.mxu1 %v3920_v2 }
 0xabb   :  { %3679 = vmatpush3.msra.mxu1 %v1684_v38 }
 0xabc   :  { %3680 = vmatprep.subr.mxu1 %v3920_v2 }
 0xabd   :  { %3681 = vmatpush3.msra.mxu1 %v1683_v39 }
 0xabe   :  { %3701 = vmatprep.subr.mxu1 %v3920_v2 }
 0xb76   :  { %v1585_v23 = vpop.f32.mrf.mxu1 }
 0xb77   :  { %v1586_v24 = vadd.f32 %v3344_v22, %v1585_v23  ;;  %v1886_v23 = vld [vmem:[%s4614_s2 + $0x1e0] sm:$0xff] }
 0xb78   :  { %v3662_v25 = vpop.f32.mrf.mxu1 }
 0xb79   :  { %v1590_v26 = vmul.f32 1.442695, %v1586_v24  ;;  %vm1589_vm5 = vcmp.gt.f32.partialorder %v1586_v24, 0.0  ;;  %v1884_v25 = vld [vmem:[%s4614_s2 + $0x1d0] sm:$0xff] }
 0xb7b   :  { %3851 = vpow2.f32 %v1590_v26  ;;  %v1883_v26 = vld [vmem:[%s4614_s2 + $0x1c8] sm:$0xff] }
 0xb88   :  { %v3852_v27 = vpop.eup %3851 }
 0xb89   :  { %v3346_v29 = vadd.f32 -1.0, %v3852_v27  ;;  %v3300_v27 = vld [vmem:[%s4614_s2 + $0x1c0] ss:$0 sm:$0xff] }
 0xb8b   :  { %v1593_v31 = vsel %vm1589_vm5, %v1586_v24, %v3346_v29  ;;  %v1885_v24 = vld [vmem:[%s4614_s2 + $0x1d8] sm:$0xff]  ;;  %v337_v29 = vadd.f32 %v3300_v27, %v4050_v32  ;;  %v1973_v32 = vld [vmem:[%s4614_s2 + $0x200] sm:$0xff] }
 0xb8c   :  { %v1594_v35 = vadd.f32 %v1593_v31, %v1506_v17 }
 0xb8e   :  { %3672 = vmatmul.mubr.msk.f32.vlgmr.msra.gmra.mxu0 %vm591_vm3, %v1594_v35 }
 0xb8f   :  { %3687 = vmatprep.mubr.msk.f32.mxu0 %vm3921_vm2, %v3920_v2  ;;  %3686 = vmatpush3.msk.msra.mxu0 %vm29_vm0, %v1801_v18 }
 0xb90   :  { %3690 = vmatprep.subr.mxu0 %v3920_v2 }
 0xc4e   :  { %v1673_v42 = vpop.f32.mrf.mxu0 }
 0xc4f   :  { %v1674_v43 = vadd.f32 %v3347_v41, %v1673_v42  ;;  %v1974_v42 = vld [vmem:[%s4614_s2 + $0x208] sm:$0xff] }
 0xc50   :  { %v3673_v44 = vpop.f32.mrf.mxu0 }
 0xc51   :  { %v1678_v45 = vmul.f32 1.442695, %v1674_v43  ;;  %vm1677_vm6 = vcmp.gt.f32.partialorder %v1674_v43, 0.0  ;;  %v1971_v44 = vld [vmem:[%s4614_s2 + $0x1f0] sm:$0xff] }
 0xc53   :  { %3853 = vpow2.f32 %v1678_v45  ;;  %v3358_v45 = vld [vmem:[%s4614_s2 + $0x1e8] ss:$0 sm:$0xff] }
 0xc60   :  { %v3854_v46 = vpop.eup %3853 }
 0xc61   :  { %v3349_v47 = vadd.f32 -1.0, %v3854_v46 }
 0xc63   :  { %v1681_v48 = vsel %vm1677_vm6, %v1674_v43, %v3349_v47  ;;  %v1972_v43 = vld [vmem:[%s4614_s2 + $0x1f8] sm:$0xff] }
 0xc64   :  { %v1682_v49 = vadd.f32 %v1681_v48, %v1594_v35 }
 0xc66   :  { %3683 = vmatmul.mubr.msk.f32.vlgmr.msra.gmra.mxu1 %vm591_vm3, %v1682_v49 }
 0xc67   :  { %3709 = vmatprep.mubr.msk.f32.mxu1 %vm3921_vm2, %v3920_v2  ;;  %3702 = vmatpush3.msra.mxu1 %v1974_v42 }
 0xc68   :  { %3703 = vmatprep.subr.mxu1 %v3920_v2 }
 0xc69   :  { %3704 = vmatpush3.msra.mxu1 %v1973_v32 }
 0xc6a   :  { %3705 = vmatprep.subr.mxu1 %v3920_v2 }
 0xc6b   :  { %3706 = vmatpush3.msra.mxu1 %v1972_v43 }
 0xc6c   :  { %3707 = vmatprep.subr.mxu1 %v3920_v2 }
 0xc6d   :  { %3708 = vmatpush3.msra.mxu1 %v1971_v44 }
 0xc6e   :  { %3723 = vmatprep.subr.mxu1 %v3920_v2 }
 0xd26   :  { %v1761_v51 = vpop.f32.mrf.mxu1 }
 0xd27   :  { %v1762_v52 = vadd.f32 %v3350_v50, %v1761_v51 }
 0xd28   :  { %v3684_v53 = vpop.f32.mrf.mxu1 }
 0xd29   :  { %v1767_v30 = vand.u32 2147483647, %v1762_v52  ;;  %vm1765_vm9 = vcmp.ge.f32.partialorder %v1762_v52, 0.0 }
 0xd2a   :  { %v1766_v13 = vsel %vm1765_vm9, 1.0, %v3922_v28 }
 0xd2b   :  { %v1773_v55 = vadd.f32 1.0, %v1767_v30  ;;  %3855 = vrcp.f32 %v1767_v30  ;;  %v3352_v57 = vadd.f32 -1.0, %v1767_v30  ;;  %vm1771_vm7 = vcmp.gt.f32.partialorder %v1767_v30, 0.41421357 }
 0xd2c   :  { %vm1768_vm8 = vcmp.gt.f32.partialorder %v1767_v30, 2.4142137  ;;  %v1778_v7 = vsel %vm1771_vm7, 0.7853982, %v3920_v2 }
 0xd2d   :  { %3857 = vrcp.f32 %v1773_v55  ;;  %v1779_v10 = vsel %vm1768_vm8, 1.5707964, %v1778_v7  ;;  %v2061_v55 = vld [vmem:[%s4614_s2 + $0x228] sm:$0xff] }
 0xd38   :  { %v3856_v56 = vpop.eup %3855 }
 0xd39   :  { %v1770_v60 = vmul.f32 -1.0, %v3856_v56  ;;  %v2060_v56 = vld [vmem:[%s4614_s2 + $0x220] sm:$0xff] }
 0xd3a   :  { %v3858_v58 = vpop.eup %3857 }
 0xd3b   :  { %v1775_v59 = vmul.f32 %v3858_v58, %v3352_v57  ;;  %v2059_v57 = vld [vmem:[%s4614_s2 + $0x218] sm:$0xff]  ;;  %v3361_v58 = vld [vmem:[%s4614_s2 + $0x210] ss:$0 sm:$0xff] }
 0xd3d   :  { %v1776_v0 = vsel %vm1771_vm7, %v1775_v59, %v1767_v30  ;;  %v2062_v30 = vld [vmem:[%s4614_s2 + $0x230] sm:$0xff] }
 0xd3e   :  { %v1777_v61 = vsel %vm1768_vm8, %v1770_v60, %v1776_v0 }
 0xd3f   :  { %v1780_v62 = vmul.f32 %v1777_v61, %v1777_v61 }
 0xd41   :  { %v1781_v63 = vmul.f32 0.080537446, %v1780_v62 }
 0xd43   :  { %v3353_v3 = vadd.f32 -0.13877685, %v1781_v63 }
 0xd45   :  { %v1783_v40 = vmul.f32 %v3353_v3, %v1780_v62 }
 0xd47   :  { %v1784_v4 = vadd.f32 0.19977711, %v1783_v40 }
 0xd49   :  { %v1785_v5 = vmul.f32 %v1784_v4, %v1780_v62  ;;  %v2194_v4 = vld [vmem:[%s4614_s2 + $0x378] sm:$0xf] }
 0xd4b   :  { %v3354_v6 = vadd.f32 -0.3333295, %v1785_v5  ;;  %v3364_v5 = vld [vmem:[%s4614_s2 + $0x238] ss:$0 sm:$0xff] }
 0xd4d   :  { %v1787_v8 = vmul.f32 %v3354_v6, %v1780_v62 }
 0xd4f   :  { %v1788_v9 = vmul.f32 %v1787_v8, %v1777_v61 }
 0xd51   :  { %v1789_v11 = vadd.f32 %v1788_v9, %v1779_v10 }
 0xd53   :  { %v1790_v12 = vadd.f32 %v1789_v11, %v1777_v61 }
 0xd55   :  { %v1791_v14 = vmul.f32 %v1790_v12, %v1766_v13 }
 0xd57   :  { %v4298_v15 = vmul.f32 0.63661975, %v1791_v14 }
 0xd59   :  { %v1793_v17 = vmul.f32 1.442695, %v4298_v15 }
 0xd5b   :  { %3859 = vpow2.f32 %v1793_v17 }
 0xd68   :  { %v3860_v16 = vpop.eup %3859 }
 0xd69   :  { %1796 = vrot.lane.b32.xlu1 %v3860_v16, %s3919_s19 }
 0xddb   :  { %v1797_v20 = vpop.permute.xlu1 %1796 }
 0xddc   :  { %v1799_v21 = vmul.f32 %v1797_v20, %v4219_v1 }
 0xdde   :  { %v4308_v22 = vadd.f32 %v1799_v21, %v1762_v52 }
 0xde0   :  { %3688 = vmatmul.mubr.msk.f32.vlgmr.msra.gmra.mxu0 %vm25_vm1, %v4308_v22 }
 0xde1   :  { %3698 = vmatprep.mubr.msk.f32.mxu0 %vm3921_vm2, %v3920_v2  ;;  %3691 = vmatpush3.msra.mxu0 %v1886_v23 }
 0xde2   :  { %3692 = vmatprep.subr.mxu0 %v3920_v2 }
 0xde3   :  { %3693 = vmatpush3.msra.mxu0 %v1885_v24 }
 0xde4   :  { %3694 = vmatprep.subr.mxu0 %v3920_v2 }
 0xde5   :  { %3695 = vmatpush3.msra.mxu0 %v1884_v25 }
 0xde6   :  { %3696 = vmatprep.subr.mxu0 %v3920_v2 }
 0xde7   :  { %3697 = vmatpush3.msra.mxu0 %v1883_v26 }
 0xde8   :  { %3712 = vmatprep.subr.mxu0 %v3920_v2 }
 0xea0   :  { %v1874_v31 = vpop.f32.mrf.mxu0 }
 0xea1   :  { %v1875_v35 = vadd.f32 %v1874_v31, %v337_v29 }
 0xea2   :  { %v3689_v36 = vpop.f32.mrf.mxu0 }
 0xea3   :  { %v1879_v37 = vmul.f32 1.442695, %v1875_v35  ;;  %vm1878_vm10 = vcmp.gt.f32.partialorder %v1875_v35, 0.0 }
 0xea5   :  { %3861 = vpow2.f32 %v1879_v37 }
 0xeb2   :  { %v3862_v38 = vpop.eup %3861 }
 0xeb3   :  { %v3357_v39 = vadd.f32 -1.0, %v3862_v38 }
 0xeb5   :  { %v1882_v41 = vsel %vm1878_vm10, %v1875_v35, %v3357_v39 }
 0xeb6   :  { %3699 = vmatmul.mubr.msk.f32.vlgmr.msra.gmra.mxu0 %vm591_vm3, %v1882_v41 }
 0xeb7   :  { %3720 = vmatprep.mubr.msk.f32.mxu0 %vm3921_vm2, %v3920_v2  ;;  %3713 = vmatpush3.msra.mxu0 %v2062_v30  ;;  %v2433_v30 = vld [vmem:[%s4614_s2 + $0x270] sm:$0xff] }
 0xeb8   :  { %3714 = vmatprep.subr.mxu0 %v3920_v2 }
 0xeb9   :  { %3715 = vmatpush3.msra.mxu0 %v2061_v55  ;;  %v2432_v55 = vld [vmem:[%s4614_s2 + $0x268] sm:$0xff] }
 0xeba   :  { %3716 = vmatprep.subr.mxu0 %v3920_v2 }
 0xebb   :  { %3717 = vmatpush3.msra.mxu0 %v2060_v56  ;;  %v2431_v56 = vld [vmem:[%s4614_s2 + $0x260] sm:$0xff] }
 0xebc   :  { %3718 = vmatprep.subr.mxu0 %v3920_v2 }
 0xebd   :  { %3719 = vmatpush3.msra.mxu0 %v2059_v57  ;;  %v2430_v57 = vld [vmem:[%s4614_s2 + $0x258] sm:$0xff] }
 0xebe   :  { %3733 = vmatprep.subr.mxu0 %v3920_v2 }
 0xf76   :  { %v1961_v46 = vpop.f32.mrf.mxu0 }
 0xf77   :  { %v1962_v47 = vadd.f32 %v3358_v45, %v1961_v46 }
 0xf78   :  { %v3700_v48 = vpop.f32.mrf.mxu0 }
 0xf79   :  { %v1966_v49 = vmul.f32 1.442695, %v1962_v47  ;;  %vm1965_vm11 = vcmp.gt.f32.partialorder %v1962_v47, 0.0 }
 0xf7b   :  { %3863 = vpow2.f32 %v1966_v49 }
 0xf88   :  { %v3864_v50 = vpop.eup %3863 }
 0xf89   :  { %v3360_v51 = vadd.f32 -1.0, %v3864_v50 }
 0xf8b   :  { %v1969_v52 = vsel %vm1965_vm11, %v1962_v47, %v3360_v51  ;;  %v2193_v47 = vld [vmem:[%s4614_s2 + $0x370] sm:$0xf] }
 0xf8c   :  { %v1970_v53 = vadd.f32 %v1969_v52, %v1882_v41 }
 0xf8e   :  { %3710 = vmatmul.mubr.msk.f32.vlgmr.msra.gmra.mxu1 %vm591_vm3, %v1970_v53 }
 0xf8f   :  { %3725 = vmatprep.mubr.msk.f32.mxu1 %vm3921_vm2, %v3920_v2  ;;  %3724 = vmatpush3.msk.msra.mxu1 %vm29_vm0, %v2194_v4  ;;  %v2521_v4 = vld [vmem:[%s4614_s2 + $0x298] sm:$0xff] }
 0xf90   :  { %3728 = vmatprep.subr.mxu1 %v3920_v2 }
0x104e   :  { %v2049_v59 = vpop.f32.mrf.mxu1 }
0x104f   :  { %v2050_v60 = vadd.f32 %v3361_v58, %v2049_v59  ;;  %v3303_v58 = vld [vmem:[%s4614_s2 + $0x250] ss:$0 sm:$0xff] }
0x1050   :  { %v3711_v0 = vpop.f32.mrf.mxu1  ;;  %v416_v59 = vadd.f32 %v3303_v58, %v4040_v19  ;;  %v2520_v19 = vld [vmem:[%s4614_s2 + $0x290] sm:$0xff] }
0x1051   :  { %v2054_v61 = vmul.f32 1.442695, %v2050_v60  ;;  %vm2053_vm12 = vcmp.gt.f32.partialorder %v2050_v60, 0.0 }
0x1053   :  { %3865 = vpow2.f32 %v2054_v61 }
0x1060   :  { %v3866_v62 = vpop.eup %3865 }
0x1061   :  { %v3363_v63 = vadd.f32 -1.0, %v3866_v62 }
0x1063   :  { %v2057_v3 = vsel %vm2053_vm12, %v2050_v60, %v3363_v63 }
0x1064   :  { %v2058_v40 = vadd.f32 %v2057_v3, %v1970_v53 }
0x1066   :  { %3721 = vmatmul.mubr.msk.f32.vlgmr.msra.gmra.mxu0 %vm591_vm3, %v2058_v40 }
0x1067   :  { %3735 = vmatprep.mubr.msk.f32.mxu0 %vm3921_vm2, %v3920_v2 }
0x1126   :  { %v2137_v6 = vpop.f32.mrf.mxu0 }
0x1127   :  { %v2138_v7 = vadd.f32 %v3364_v5, %v2137_v6  ;;  %v2519_v5 = vld [vmem:[%s4614_s2 + $0x288] sm:$0xff]  ;;  %v2518_v6 = vld [vmem:[%s4614_s2 + $0x280] sm:$0xff] }
0x1128   :  { %v3722_v8 = vpop.f32.mrf.mxu0 }
0x1129   :  { %2173 = vrot.lane.b32.xlu0 %v2138_v7, %s3923_s21  ;;  %v2143_v9 = vand.u32 2147483647, %v2138_v7  ;;  %vm2141_vm15 = vcmp.ge.f32.partialorder %v2138_v7, 0.0  ;;  %v3376_v7 = vld [vmem:[%s4614_s2 + $0x278] ss:$0 sm:$0xff] }
0x112a   :  { %v2142_v39 = vsel %vm2141_vm15, 1.0, %v3922_v28  ;;  %vm1257_vm15 = vcmask 27648  }
0x112b   :  { %v2149_v10 = vadd.f32 1.0, %v2143_v9  ;;  %v3366_v12 = vadd.f32 -1.0, %v2143_v9  ;;  %vm2147_vm13 = vcmp.gt.f32.partialorder %v2143_v9, 0.41421357  ;;  %vm2144_vm14 = vcmp.gt.f32.partialorder %v2143_v9, 2.4142137 }
0x112c   :  { %v2154_v31 = vsel %vm2147_vm13, 0.7853982, %v3920_v2 }
0x112d   :  { %3867 = vrcp.f32 %v2149_v10  ;;  %v2155_v36 = vsel %vm2144_vm14, 1.5707964, %v2154_v31 }
0x112e   :  { %3869 = vrcp.f32 %v2143_v9 }
0x113a   :  { %v3868_v11 = vpop.eup %3867 }
0x113b   :  { %v2151_v13 = vmul.f32 %v3868_v11, %v3366_v12  ;;  %v3870_v14 = vpop.eup %3869 }
0x113c   :  { %v2146_v18 = vmul.f32 -1.0, %v3870_v14 }
0x113d   :  { %v2152_v17 = vsel %vm2147_vm13, %v2151_v13, %v2143_v9 }
0x113e   :  { %v2153_v16 = vsel %vm2144_vm14, %v2146_v18, %v2152_v17  ;;  %v2609_v18 = vld [vmem:[%s4614_s2 + $0x2c0] sm:$0xff] }
0x113f   :  { %v2156_v20 = vmul.f32 %v2153_v16, %v2153_v16 }
0x1141   :  { %v2157_v21 = vmul.f32 0.080537446, %v2156_v20 }
0x1143   :  { %v3367_v23 = vadd.f32 -0.13877685, %v2157_v21  ;;  %v2606_v21 = vld [vmem:[%s4614_s2 + $0x2a8] sm:$0xff] }
0x1145   :  { %v2159_v24 = vmul.f32 %v3367_v23, %v2156_v20  ;;  %v3379_v23 = vld [vmem:[%s4614_s2 + $0x2a0] ss:$0 sm:$0xff] }
0x1147   :  { %v2160_v25 = vadd.f32 0.19977711, %v2159_v24 }
0x1149   :  { %v2161_v26 = vmul.f32 %v2160_v25, %v2156_v20 }
0x114b   :  { %v3368_v27 = vadd.f32 -0.3333295, %v2161_v26 }
0x114d   :  { %v2163_v29 = vmul.f32 %v3368_v27, %v2156_v20  ;;  %v2607_v20 = vld [vmem:[%s4614_s2 + $0x2b0] sm:$0xff] }
0x114f   :  { %v2164_v35 = vmul.f32 %v2163_v29, %v2153_v16 }
0x1151   :  { %v2165_v37 = vadd.f32 %v2164_v35, %v2155_v36 }
0x1153   :  { %v2166_v38 = vadd.f32 %v2165_v37, %v2153_v16  ;;  %v2608_v16 = vld [vmem:[%s4614_s2 + $0x2b8] sm:$0xff]  ;;  %v3382_v37 = vld [vmem:[%s4614_s2 + $0x2c8] ss:$0 sm:$0xff] }
0x1155   :  { %v2167_v41 = vmul.f32 %v2166_v38, %v2142_v39 }
0x1157   :  { %v4392_v42 = vmul.f32 0.63661975, %v2167_v41 }
0x1159   :  { %v2169_v32 = vmul.f32 1.442695, %v4392_v42 }
0x115b   :  { %3871 = vpow2.f32 %v2169_v32 }
0x1168   :  { %v3872_v43 = vpop.eup %3871 }
0x1169   :  { %v2171_v44 = vmul.f32 %v3872_v43, %v4219_v1  ;;  %v2346_v1 = vld [vmem:[%s4614_s2 + $0x240] sm:$0xf] }
0x116a   :  { %3734 = vmatpush3.msk.msra.mxu0 %vm29_vm0, %v2346_v1 }
0x116b   :  { %3749 = vmatprep.subr.mxu0 %v3920_v2 }
0x119b   :  { %v2174_v45 = vpop.permute.xlu0 %2173 }
0x119c   :  { %v2176_v46 = vadd.f32 %v2174_v45, %v2171_v44 }
0x119e   :  { %2196 = vrot.lane.b32.xlu1 %v2176_v46, %s3919_s19 }
0x1210   :  { %v2197_v48 = vpop.permute.xlu1 %2196 }
0x1211   :  { %3726 = vmatmul.mubr.msk.f32.vlgmr.msra.gmra.mxu1 %vm25_vm1, %v2197_v48 }
0x1212   :  { %3729 = vmatpush3.msk.msra.mxu1 %vm29_vm0, %v2193_v47  ;;  %3730 = vmatprep.mubr.msk.f32.mxu1 %vm3921_vm2, %v3920_v2 }
0x1213   :  { %3738 = vmatprep.subr.mxu1 %v3920_v2 }
0x1215   :  { %3731 = vmatmul.mubr.msk.f32.vlgmr.msra.gmra.mxu1 %vm25_vm1, %v4308_v22 }
0x1216   :  { %3746 = vmatprep.mubr.msk.f32.mxu1 %vm3921_vm2, %v3920_v2  ;;  %3739 = vmatpush3.msra.mxu1 %v2433_v30 }
0x1217   :  { %3740 = vmatprep.subr.mxu1 %v3920_v2 }
0x1218   :  { %3741 = vmatpush3.msra.mxu1 %v2432_v55 }
0x1219   :  { %3742 = vmatprep.subr.mxu1 %v3920_v2 }
0x121a   :  { %3743 = vmatpush3.msra.mxu1 %v2431_v56 }
0x121b   :  { %3744 = vmatprep.subr.mxu1 %v3920_v2 }
0x121c   :  { %3745 = vmatpush3.msra.mxu1 %v2430_v57 }
0x121d   :  { %3760 = vmatprep.subr.mxu1 %v3920_v2 }
0x12d1   :  { %v2269_v49 = vpop.f32.mrf.mxu1 }
0x12d3   :  { %v3727_v50 = vpop.f32.mrf.mxu1 }
0x12d5   :  { %v2342_v51 = vpop.f32.mrf.mxu1 }
0x12d6   :  { %v4414_v52 = vadd.f32 %v2342_v51, %v2269_v49 }
0x12d7   :  { %v3732_v53 = vpop.f32.mrf.mxu1 }
0x12d8   :  { %2348 = vrot.lane.b32.xlu0 %v4414_v52, %s3919_s19 }
0x134a   :  { %v2349_v22 = vpop.permute.xlu0 %2348 }
0x134b   :  { %3736 = vmatmul.mubr.msk.f32.vlgmr.msra.gmra.mxu0 %vm25_vm1, %v2349_v22 }
0x134c   :  { %3757 = vmatprep.mubr.msk.f32.mxu0 %vm3921_vm2, %v3920_v2  ;;  %3750 = vmatpush3.msra.mxu0 %v2521_v4  ;;  %v2724_v4 = vld [vmem:[%s4614_s2 + $0x2d0] sm:$0xf] }
0x134d   :  { %3751 = vmatprep.subr.mxu0 %v3920_v2 }
0x134e   :  { %3752 = vmatpush3.msra.mxu0 %v2520_v19 }
0x134f   :  { %3753 = vmatprep.subr.mxu0 %v3920_v2 }
0x1350   :  { %3754 = vmatpush3.msra.mxu0 %v2519_v5 }
0x1351   :  { %3755 = vmatprep.subr.mxu0 %v3920_v2 }
0x1352   :  { %3756 = vmatpush3.msra.mxu0 %v2518_v6 }
0x1353   :  { %3771 = vmatprep.subr.mxu0 %v3920_v2 }
0x140b   :  { %v2421_v60 = vpop.f32.mrf.mxu0 }
0x140c   :  { %v2422_v0 = vadd.f32 %v2421_v60, %v416_v59 }
0x140d   :  { %v3737_v61 = vpop.f32.mrf.mxu0 }
0x140e   :  { %v2426_v62 = vmul.f32 1.442695, %v2422_v0  ;;  %vm2425_vm4 = vcmp.gt.f32.partialorder %v2422_v0, 0.0 }
0x1410   :  { %3873 = vpow2.f32 %v2426_v62 }
0x141d   :  { %v3874_v63 = vpop.eup %3873 }
0x141e   :  { %v3375_v3 = vadd.f32 -1.0, %v3874_v63 }
0x1420   :  { %v2429_v40 = vsel %vm2425_vm4, %v2422_v0, %v3375_v3  ;;  %vm3271_vm4 = vcmask 3072  }
0x1421   :  { %3747 = vmatmul.mubr.msk.f32.vlgmr.msra.gmra.mxu1 %vm591_vm3, %v2429_v40 }
0x1422   :  { %3768 = vmatprep.mubr.msk.f32.mxu1 %vm3921_vm2, %v3920_v2  ;;  %3761 = vmatpush3.msra.mxu1 %v2609_v18 }
0x1423   :  { %3762 = vmatprep.subr.mxu1 %v3920_v2 }
0x1424   :  { %3763 = vmatpush3.msra.mxu1 %v2608_v16 }
0x1425   :  { %3764 = vmatprep.subr.mxu1 %v3920_v2 }
0x1426   :  { %3765 = vmatpush3.msra.mxu1 %v2607_v20 }
0x1427   :  { %3766 = vmatprep.subr.mxu1 %v3920_v2 }
0x1428   :  { %3767 = vmatpush3.msra.mxu1 %v2606_v21 }
0x1429   :  { %3787 = vmatprep.subr.mxu1 %v3920_v2 }
0x14e1   :  { %v2508_v8 = vpop.f32.mrf.mxu1 }
0x14e2   :  { %v2509_v9 = vadd.f32 %v3376_v7, %v2508_v8  ;;  %v2809_v8 = vld [vmem:[%s4614_s2 + $0x300] sm:$0xff] }
0x14e3   :  { %v3748_v10 = vpop.f32.mrf.mxu1 }
0x14e4   :  { %v2513_v11 = vmul.f32 1.442695, %v2509_v9  ;;  %vm2512_vm5 = vcmp.gt.f32.partialorder %v2509_v9, 0.0  ;;  %v2807_v10 = vld [vmem:[%s4614_s2 + $0x2f0] sm:$0xff] }
0x14e6   :  { %3875 = vpow2.f32 %v2513_v11  ;;  %v2806_v11 = vld [vmem:[%s4614_s2 + $0x2e8] sm:$0xff] }
0x14f3   :  { %v3876_v12 = vpop.eup %3875 }
0x14f4   :  { %v3378_v13 = vadd.f32 -1.0, %v3876_v12  ;;  %v3306_v12 = vld [vmem:[%s4614_s2 + $0x2e0] ss:$0 sm:$0xff] }
0x14f6   :  { %v2516_v14 = vsel %vm2512_vm5, %v2509_v9, %v3378_v13  ;;  %v2808_v9 = vld [vmem:[%s4614_s2 + $0x2f8] sm:$0xff]  ;;  %v495_v13 = vadd.f32 %v3306_v12, %v4052_v34  ;;  %v2896_v34 = vld [vmem:[%s4614_s2 + $0x320] sm:$0xff] }
0x14f7   :  { %v2517_v17 = vadd.f32 %v2516_v14, %v2429_v40 }
0x14f9   :  { %3758 = vmatmul.mubr.msk.f32.vlgmr.msra.gmra.mxu0 %vm591_vm3, %v2517_v17 }
0x14fa   :  { %3773 = vmatprep.mubr.msk.f32.mxu0 %vm3921_vm2, %v3920_v2  ;;  %3772 = vmatpush3.msk.msra.mxu0 %vm29_vm0, %v2724_v4 }
0x14fb   :  { %3776 = vmatprep.subr.mxu0 %v3920_v2 }
0x15b9   :  { %v2596_v24 = vpop.f32.mrf.mxu0 }
0x15ba   :  { %v2597_v25 = vadd.f32 %v3379_v23, %v2596_v24  ;;  %v2897_v24 = vld [vmem:[%s4614_s2 + $0x328] sm:$0xff] }
0x15bb   :  { %v3759_v26 = vpop.f32.mrf.mxu0 }
0x15bc   :  { %v2601_v27 = vmul.f32 1.442695, %v2597_v25  ;;  %vm2600_vm6 = vcmp.gt.f32.partialorder %v2597_v25, 0.0  ;;  %v2894_v26 = vld [vmem:[%s4614_s2 + $0x310] sm:$0xff] }
0x15be   :  { %3877 = vpow2.f32 %v2601_v27  ;;  %v3390_v27 = vld [vmem:[%s4614_s2 + $0x308] ss:$0 sm:$0xff] }
0x15cb   :  { %v3878_v29 = vpop.eup %3877 }
0x15cc   :  { %v3381_v31 = vadd.f32 -1.0, %v3878_v29 }
0x15ce   :  { %v2604_v35 = vsel %vm2600_vm6, %v2597_v25, %v3381_v31  ;;  %v2895_v25 = vld [vmem:[%s4614_s2 + $0x318] sm:$0xff] }
0x15cf   :  { %v2605_v36 = vadd.f32 %v2604_v35, %v2517_v17 }
0x15d1   :  { %3769 = vmatmul.mubr.msk.f32.vlgmr.msra.gmra.mxu1 %vm591_vm3, %v2605_v36 }
0x15d2   :  { %3795 = vmatprep.mubr.msk.f32.mxu1 %vm3921_vm2, %v3920_v2  ;;  %3788 = vmatpush3.msra.mxu1 %v2897_v24 }
0x15d3   :  { %3789 = vmatprep.subr.mxu1 %v3920_v2 }
0x15d4   :  { %3790 = vmatpush3.msra.mxu1 %v2896_v34 }
0x15d5   :  { %3791 = vmatprep.subr.mxu1 %v3920_v2 }
0x15d6   :  { %3792 = vmatpush3.msra.mxu1 %v2895_v25 }
0x15d7   :  { %3793 = vmatprep.subr.mxu1 %v3920_v2 }
0x15d8   :  { %3794 = vmatpush3.msra.mxu1 %v2894_v26 }
0x15d9   :  { %3809 = vmatprep.subr.mxu1 %v3920_v2 }
0x1691   :  { %v2684_v38 = vpop.f32.mrf.mxu1 }
0x1692   :  { %v2685_v39 = vadd.f32 %v3382_v37, %v2684_v38 }
0x1693   :  { %v3770_v41 = vpop.f32.mrf.mxu1 }
0x1694   :  { %v2690_v32 = vand.u32 2147483647, %v2685_v39  ;;  %vm2688_vm9 = vcmp.ge.f32.partialorder %v2685_v39, 0.0 }
0x1695   :  { %v2689_v62 = vsel %vm2688_vm9, 1.0, %v3922_v28 }
0x1696   :  { %v2696_v43 = vadd.f32 1.0, %v2690_v32  ;;  %3879 = vrcp.f32 %v2690_v32  ;;  %v3384_v45 = vadd.f32 -1.0, %v2690_v32  ;;  %vm2694_vm7 = vcmp.gt.f32.partialorder %v2690_v32, 0.41421357 }
0x1697   :  { %vm2691_vm8 = vcmp.gt.f32.partialorder %v2690_v32, 2.4142137  ;;  %v2701_v57 = vsel %vm2694_vm7, 0.7853982, %v3920_v2 }
0x1698   :  { %3881 = vrcp.f32 %v2696_v43  ;;  %v2702_v60 = vsel %vm2691_vm8, 1.5707964, %v2701_v57  ;;  %v2984_v43 = vld [vmem:[%s4614_s2 + $0x348] sm:$0xff] }
0x16a3   :  { %v3880_v44 = vpop.eup %3879 }
0x16a4   :  { %v2693_v48 = vmul.f32 -1.0, %v3880_v44  ;;  %v2983_v44 = vld [vmem:[%s4614_s2 + $0x340] sm:$0xff] }
0x16a5   :  { %v3882_v46 = vpop.eup %3881 }
0x16a6   :  { %v2698_v47 = vmul.f32 %v3882_v46, %v3384_v45  ;;  %v2982_v45 = vld [vmem:[%s4614_s2 + $0x338] sm:$0xff]  ;;  %v3393_v46 = vld [vmem:[%s4614_s2 + $0x330] ss:$0 sm:$0xff] }
0x16a8   :  { %v2699_v1 = vsel %vm2694_vm7, %v2698_v47, %v2690_v32  ;;  %v2985_v32 = vld [vmem:[%s4614_s2 + $0x350] sm:$0xff] }
0x16a9   :  { %v2700_v49 = vsel %vm2691_vm8, %v2693_v48, %v2699_v1 }
0x16aa   :  { %v2703_v50 = vmul.f32 %v2700_v49, %v2700_v49 }
0x16ac   :  { %v2704_v51 = vmul.f32 0.080537446, %v2703_v50 }
0x16ae   :  { %v3385_v53 = vadd.f32 -0.13877685, %v2704_v51 }
0x16b0   :  { %v2706_v22 = vmul.f32 %v3385_v53, %v2703_v50 }
0x16b2   :  { %v2707_v30 = vadd.f32 0.19977711, %v2706_v22 }
0x16b4   :  { %v2708_v55 = vmul.f32 %v2707_v30, %v2703_v50  ;;  %v3396_v30 = vld [vmem:[%s4614_s2 + $0x358] ss:$0 sm:$0xff] }
0x16b6   :  { %v3386_v56 = vadd.f32 -0.3333295, %v2708_v55 }
0x16b8   :  { %v2710_v58 = vmul.f32 %v3386_v56, %v2703_v50 }
0x16ba   :  { %v2711_v59 = vmul.f32 %v2710_v58, %v2700_v49 }
0x16bc   :  { %v2712_v0 = vadd.f32 %v2711_v59, %v2702_v60 }
0x16be   :  { %v2713_v61 = vadd.f32 %v2712_v0, %v2700_v49 }
0x16c0   :  { %v2714_v63 = vmul.f32 %v2713_v61, %v2689_v62 }
0x16c2   :  { %v4493_v3 = vmul.f32 0.63661975, %v2714_v63 }
0x16c4   :  { %v2716_v40 = vmul.f32 1.442695, %v4493_v3 }
0x16c6   :  { %3883 = vpow2.f32 %v2716_v40 }
0x16d3   :  { %v3884_v19 = vpop.eup %3883 }
0x16d4   :  { %2719 = vrot.lane.b32.xlu1 %v3884_v19, %s3919_s19 }
0x1746   :  { %v2720_v5 = vpop.permute.xlu1 %2719 }
0x1747   :  { %v2722_v6 = vmul.f32 %v2720_v5, %v4414_v52 }
0x1749   :  { %v4503_v7 = vadd.f32 %v2722_v6, %v2685_v39 }
0x174b   :  { %3774 = vmatmul.mubr.msk.f32.vlgmr.msra.gmra.mxu0 %vm25_vm1, %v4503_v7 }
0x174c   :  { %3784 = vmatprep.mubr.msk.f32.mxu0 %vm3921_vm2, %v3920_v2  ;;  %3777 = vmatpush3.msra.mxu0 %v2809_v8 }
0x174d   :  { %3778 = vmatprep.subr.mxu0 %v3920_v2 }
0x174e   :  { %3779 = vmatpush3.msra.mxu0 %v2808_v9 }
0x174f   :  { %3780 = vmatprep.subr.mxu0 %v3920_v2 }
0x1750   :  { %3781 = vmatpush3.msra.mxu0 %v2807_v10 }
0x1751   :  { %3782 = vmatprep.subr.mxu0 %v3920_v2 }
0x1752   :  { %3783 = vmatpush3.msra.mxu0 %v2806_v11 }
0x1753   :  { %3798 = vmatprep.subr.mxu0 %v3920_v2 }
0x180b   :  { %v2797_v14 = vpop.f32.mrf.mxu0 }
0x180c   :  { %v2798_v17 = vadd.f32 %v2797_v14, %v495_v13 }
0x180d   :  { %v3775_v18 = vpop.f32.mrf.mxu0 }
0x180e   :  { %v2802_v16 = vmul.f32 1.442695, %v2798_v17  ;;  %vm2801_vm10 = vcmp.gt.f32.partialorder %v2798_v17, 0.0 }
0x1810   :  { %3885 = vpow2.f32 %v2802_v16 }
0x181d   :  { %v3886_v20 = vpop.eup %3885 }
0x181e   :  { %v3389_v21 = vadd.f32 -1.0, %v3886_v20 }
0x1820   :  { %v2805_v23 = vsel %vm2801_vm10, %v2798_v17, %v3389_v21 }
0x1821   :  { %3785 = vmatmul.mubr.msk.f32.vlgmr.msra.gmra.mxu0 %vm591_vm3, %v2805_v23 }
0x1822   :  { %3806 = vmatprep.mubr.msk.f32.mxu0 %vm3921_vm2, %v3920_v2  ;;  %3799 = vmatpush3.msra.mxu0 %v2985_v32 }
0x1823   :  { %3800 = vmatprep.subr.mxu0 %v3920_v2 }
0x1824   :  { %3801 = vmatpush3.msra.mxu0 %v2984_v43 }
0x1825   :  { %3802 = vmatprep.subr.mxu0 %v3920_v2 }
0x1826   :  { %3803 = vmatpush3.msra.mxu0 %v2983_v44 }
0x1827   :  { %3804 = vmatprep.subr.mxu0 %v3920_v2 }
0x1828   :  { %3805 = vmatpush3.msra.mxu0 %v2982_v45 }
0x18e1   :  { %v2884_v29 = vpop.f32.mrf.mxu0 }
0x18e2   :  { %v2885_v31 = vadd.f32 %v3390_v27, %v2884_v29 }
0x18e3   :  { %v3786_v35 = vpop.f32.mrf.mxu0 }
0x18e4   :  { %v2889_v36 = vmul.f32 1.442695, %v2885_v31  ;;  %vm2888_vm11 = vcmp.gt.f32.partialorder %v2885_v31, 0.0 }
0x18e6   :  { %3887 = vpow2.f32 %v2889_v36 }
0x18f3   :  { %v3888_v37 = vpop.eup %3887 }
0x18f4   :  { %v3392_v38 = vadd.f32 -1.0, %v3888_v37 }
0x18f6   :  { %v2892_v39 = vsel %vm2888_vm11, %v2885_v31, %v3392_v38 }
0x18f7   :  { %v2893_v41 = vadd.f32 %v2892_v39, %v2805_v23  ;;  %v3116_v39 = vld [vmem:[%s4614_s2 + $0x380] sm:$0xf] }
0x18f9   :  { %3796 = vmatmul.mubr.msk.f32.vlgmr.msra.gmra.mxu1 %vm591_vm3, %v2893_v41 }
0x18fa   :  { %3811 = vmatprep.mubr.msk.f32.mxu1 %vm3921_vm2, %v3920_v2 }
0x19b9   :  { %v2972_v47 = vpop.f32.mrf.mxu1 }
0x19ba   :  { %v2973_v48 = vadd.f32 %v3393_v46, %v2972_v47 }
0x19bb   :  { %v3797_v1 = vpop.f32.mrf.mxu1 }
0x19bc   :  { %v2977_v49 = vmul.f32 1.442695, %v2973_v48  ;;  %vm2976_vm12 = vcmp.gt.f32.partialorder %v2973_v48, 0.0 }
0x19be   :  { %3889 = vpow2.f32 %v2977_v49 }
0x19cb   :  { %v3890_v50 = vpop.eup %3889 }
0x19cc   :  { %v3395_v51 = vadd.f32 -1.0, %v3890_v50 }
0x19ce   :  { %v2980_v53 = vsel %vm2976_vm12, %v2973_v48, %v3395_v51 }
0x19cf   :  { %v2981_v22 = vadd.f32 %v2980_v53, %v2893_v41 }
0x19d1   :  { %3807 = vmatmul.mubr.msk.f32.vlgmr.msra.gmra.mxu0 %vm591_vm3, %v2981_v22 }
0x1a91   :  { %v3060_v55 = vpop.f32.mrf.mxu0 }
0x1a92   :  { %v3061_v56 = vadd.f32 %v3396_v30, %v3060_v55 }
0x1a93   :  { %v3808_v57 = vpop.f32.mrf.mxu0 }
0x1a94   :  { %v3066_v58 = vand.u32 2147483647, %v3061_v56  ;;  %3096 = vrot.lane.b32.xlu0 %v3061_v56, %s3923_s21  ;;  %vm3064_vm14 = vcmp.ge.f32.partialorder %v3061_v56, 0.0 }
0x1a95   :  { %v3065_v14 = vsel %vm3064_vm14, 1.0, %v3922_v28 }
0x1a96   :  { %v3072_v59 = vadd.f32 1.0, %v3066_v58  ;;  %3891 = vrcp.f32 %v3066_v58  ;;  %v3398_v0 = vadd.f32 -1.0, %v3066_v58  ;;  %vm3070_vm3 = vcmp.gt.f32.partialorder %v3066_v58, 0.41421357 }
0x1a97   :  { %vm3067_vm13 = vcmp.gt.f32.partialorder %v3066_v58, 2.4142137 }
0x1a98   :  { %3893 = vrcp.f32 %v3072_v59  ;;  %1254 = vrot.lane.b32.xlu0 %v4103_v33, %s3919_s19 }
0x1a9c   :  { %1262 = vrot.lane.b32.xlu0 %v4197_v54, %s3919_s19 }
0x1aa0   :  { %2178 = vrot.lane.b32.xlu0 %v4298_v15, %s3919_s19 }
0x1aa3   :  { %v3892_v60 = vpop.eup %3891 }
0x1aa4   :  { %2185 = vrot.lane.b32.xlu0 %v4392_v42, %s3919_s19  ;;  %v3069_v63 = vmul.f32 -1.0, %v3892_v60  ;;  %v3077_v42 = vsel %vm3070_vm3, 0.7853982, %v3920_v2 }
0x1aa5   :  { %v3894_v61 = vpop.eup %3893  ;;  %v3078_v11 = vsel %vm3067_vm13, 1.5707964, %v3077_v42 }
0x1aa6   :  { %v3074_v62 = vmul.f32 %v3894_v61, %v3398_v0 }
0x1aa8   :  { %3101 = vrot.lane.b32.xlu0 %v4493_v3, %s3919_s19  ;;  %v3075_v33 = vsel %vm3070_vm3, %v3074_v62, %v3066_v58  ;;  %v3117_v3 = vld [vmem:[%s4614_s2 + $0x388] sm:$0xf] }
0x1aa9   :  { %v3076_v40 = vsel %vm3067_vm13, %v3069_v63, %v3075_v33  ;;  %3810 = vmatpush3.msk.msra.mxu1 %vm29_vm0, %v3117_v3 }
0x1aaa   :  { %v3079_v4 = vmul.f32 %v3076_v40, %v3076_v40  ;;  %3814 = vmatprep.subr.mxu1 %v3920_v2 }
0x1aac   :  { %v3080_v54 = vmul.f32 0.080537446, %v3079_v4 }
0x1aae   :  { %v3399_v19 = vadd.f32 -0.13877685, %v3080_v54 }
0x1ab0   :  { %v3082_v5 = vmul.f32 %v3399_v19, %v3079_v4 }
0x1ab2   :  { %v3083_v15 = vadd.f32 0.19977711, %v3082_v5 }
0x1ab4   :  { %v3084_v6 = vmul.f32 %v3083_v15, %v3079_v4 }
0x1ab6   :  { %v3400_v8 = vadd.f32 -0.3333295, %v3084_v6 }
0x1ab8   :  { %v3086_v9 = vmul.f32 %v3400_v8, %v3079_v4 }
0x1aba   :  { %v3087_v10 = vmul.f32 %v3086_v9, %v3076_v40 }
0x1abc   :  { %v3088_v12 = vadd.f32 %v3087_v10, %v3078_v11 }
0x1abe   :  { %v3089_v13 = vadd.f32 %v3088_v12, %v3076_v40 }
0x1ac0   :  { %v3090_v17 = vmul.f32 %v3089_v13, %v3065_v14 }
0x1ac2   :  { %v3091_v18 = vmul.f32 0.63661975, %v3090_v17 }
0x1ac4   :  { %3108 = vrot.lane.b32.xlu0 %v3091_v18, %s3919_s19  ;;  %v3092_v16 = vmul.f32 1.442695, %v3091_v18 }
0x1ac6   :  { %3895 = vpow2.f32 %v3092_v16 }
0x1ad3   :  { %v3896_v20 = vpop.eup %3895 }
0x1ad4   :  { %v3094_v21 = vmul.f32 %v3896_v20, %v4414_v52 }
0x1b06   :  { %v3097_v23 = vpop.permute.xlu0 %3096 }
0x1b07   :  { %v3099_v24 = vadd.f32 %v3097_v23, %v3094_v21 }
0x1b09   :  { %3119 = vrot.lane.b32.xlu1 %v3099_v24, %s3919_s19 }
0x1b0a   :  { %v1255_v34 = vpop.permute.xlu0 %1254 }
0x1b0b   :  { %v1258_v27 = vsel %vm1257_vm15, %v1255_v34, 0.0 }
0x1b0e   :  { %v1263_v25 = vpop.permute.xlu0 %1262 }
0x1b0f   :  { %v1265_v26 = vsel %vm1257_vm15, %v1263_v25, 0.0 }
0x1b10   :  { %1266 = vadd.xlane.f32.xlu0 %v1265_v26 }
0x1b12   :  { %v2179_v28 = vpop.permute.xlu0 %2178 }
0x1b13   :  { %v2181_v31 = vsel %vm1257_vm15, %v2179_v28, 0.0 }
0x1b16   :  { %v2186_v29 = vpop.permute.xlu0 %2185 }
0x1b17   :  { %v2188_v35 = vsel %vm1257_vm15, %v2186_v29, 0.0 }
0x1b1a   :  { %v3102_v36 = vpop.permute.xlu0 %3101 }
0x1b1b   :  { %v3104_v37 = vsel %vm1257_vm15, %v3102_v36, 0.0 }
0x1b2d   :  { %1259 = vadd.xlane.f32.xlu1 %v1258_v27 }
0x1b31   :  { %2182 = vadd.xlane.f32.xlu1 %v2181_v31 }
0x1b35   :  { %2189 = vadd.xlane.f32.xlu1 %v2188_v35 }
0x1b36   :  { %v3109_v52 = vpop.permute.xlu0 %3108 }
0x1b37   :  { %v3111_v38 = vsel %vm1257_vm15, %v3109_v52, 0.0 }
0x1b39   :  { %3105 = vadd.xlane.f32.xlu1 %v3104_v37 }
0x1b3d   :  { %3112 = vadd.xlane.f32.xlu1 %v3111_v38 }
0x1b7b   :  { %v3120_v41 = vpop.permute.xlu1 %3119 }
0x1b7c   :  { %3812 = vmatmul.mubr.msk.f32.vlgmr.msra.gmra.mxu1 %vm25_vm1, %v3120_v41 }
0x1b7d   :  { %3815 = vmatpush3.msk.msra.mxu1 %vm29_vm0, %v3116_v39  ;;  %3816 = vmatprep.mubr.msk.f32.mxu1 %vm3921_vm2, %v3920_v2  ;;  %vm3269_vm0 = vcmask 60416  }
0x1b80   :  { %3817 = vmatmul.mubr.msk.f32.vlgmr.msra.gmra.mxu1 %vm25_vm1, %v4503_v7 }
0x1b99   :  { %v1267_v47 = vpop.xlane.xlu0 %1266 }
0x1bb6   :  { %v1260_v32 = vpop.xlane.xlu1 %1259 }
0x1bb7   :  { %v1268_v48 = vadd.f32 %v1267_v47, %v1260_v32 }
0x1bba   :  { %v2183_v43 = vpop.xlane.xlu1 %2182 }
0x1bbe   :  { %v2190_v44 = vpop.xlane.xlu1 %2189 }
0x1bbf   :  { %v2191_v46 = vadd.f32 %v2190_v44, %v2183_v43 }
0x1bc1   :  { %v2192_v49 = vadd.f32 %v2191_v46, %v1268_v48 }
0x1bc2   :  { %v3106_v45 = vpop.xlane.xlu1 %3105 }
0x1bc6   :  { %v3113_v1 = vpop.xlane.xlu1 %3112 }
0x1bc7   :  { %v3114_v50 = vadd.f32 %v3113_v1, %v3106_v45 }
0x1bc9   :  { %v3115_v51 = vadd.f32 %v3114_v50, %v2192_v49 }
0x1bcb   :  { %3272 = vst.msk [vmem:[%s4616_s4] sm:$0xf] %vm3271_vm4, %v3115_v51 }
0x1c3c   :  { %v3192_v2 = vpop.f32.mrf.mxu1 }
0x1c3e   :  { %v3813_v53 = vpop.f32.mrf.mxu1 }
0x1c40   :  { %v3265_v7 = vpop.f32.mrf.mxu1 }
0x1c41   :  { %v3266_v22 = vadd.f32 %v3265_v7, %v3192_v2 }
0x1c42   :  { %v3818_v30 = vpop.f32.mrf.mxu1 }
0x1c43   :  { %3270 = vst.msk [vmem:[#allocation2] sm:$0xf] %vm3269_vm0, %v3266_v22 }
0x1c44   :  { %3908 = shalt.err (!%p3905_p4)
}
0x1c45   :  { %3282 = dma.vmem_to_hbm [thread:$0]  %s3280_s10, 64, %s4615_s3, [#allocation3]  }
0x1c46   :  { %3917 = dma.done.wait [#allocation3], 64  }
0x1c47   :  { %3918 = vsyncadd [#allocation3], 4294967232 }
0x1c48   :  { %3290 = vsyncpa [#allocation3], 1 }

</bundles_post_ra>
